<compile_context>
chip_gen: v5e
topology: v5e:2x2
jax: 0.10.0
libtpu: 0.0.40
codegen_flags: <defaults>
</compile_context>

<pallas_src>
import functools

import jax
import jax.numpy as jnp
from jax.experimental import pallas as pl
from jax.experimental.pallas import tpu as pltpu

NEG_SLOPE = 0.01          # F.leaky_relu default negative slope
BN_EPS = 1e-5             # nn.BatchNorm1d default eps
MXU_DTYPE = jnp.bfloat16  # MXU operand dtype (set to jnp.float32 for exact f32)


def _leaky_relu(x):
    return jnp.where(x > 0, x, NEG_SLOPE * x)


# --------------------------------------------------------------------------- #
# Kernel: 7 MXU matmuls, everything VMEM-resident (~1.6 MiB of weights)
# --------------------------------------------------------------------------- #
def tram_kernel(
    xw_ref, xm_ref,                      # (TM, rows*in) f32 each
    w1w_ref, b1w_ref, w1m_ref, b1m_ref,  # (rows*in, rows*64) bf16, (1, rows*64) f32
    w2w_ref, b2w_ref, w2m_ref, b2m_ref,  # (rows*64, 256) bf16, (1, 256) f32
    waggw_ref, waggm_ref, bagg_ref,      # (256, 128) bf16 x2, (1, 128) f32
    w3_ref, b3_ref,                      # (128, out_pad) bf16, (1, out_pad) f32
    out_ref,                             # (TM, out_pad) f32
):
    f32 = jnp.float32

    # ---- fc1 (+ folded bn1): block-diagonal over rows, one matmul per branch
    hw = _leaky_relu(
        jnp.dot(xw_ref[...].astype(w1w_ref.dtype), w1w_ref[...],
                preferred_element_type=f32) + b1w_ref[...])          # (TM, rows*64)
    hm = _leaky_relu(
        jnp.dot(xm_ref[...].astype(w1m_ref.dtype), w1m_ref[...],
                preferred_element_type=f32) + b1m_ref[...])

    # ---- fc2 (+ folded bn2): single K=rows*64 contraction per branch -------
    o2w = _leaky_relu(
        jnp.dot(hw.astype(w2w_ref.dtype), w2w_ref[...],
                preferred_element_type=f32) + b2w_ref[...])           # (TM, 256)
    o2m = _leaky_relu(
        jnp.dot(hm.astype(w2m_ref.dtype), w2m_ref[...],
                preferred_element_type=f32) + b2m_ref[...])

    # ---- aggregation (+ folded bna): cat(out2_wt, out2_mut) @ Wagg done as
    # ---- two half-K dots (avoids an in-kernel lane concat), then fc3 --------
    agg = _leaky_relu(
        jnp.dot(o2w.astype(waggw_ref.dtype), waggw_ref[...], preferred_element_type=f32)
        + jnp.dot(o2m.astype(waggm_ref.dtype), waggm_ref[...], preferred_element_type=f32)
        + bagg_ref[...])                                              # (TM, 128)

    out_ref[...] = (
        jnp.dot(agg.astype(w3_ref.dtype), w3_ref[...], preferred_element_type=f32)
        + b3_ref[...])                                                # (TM, out_pad)


# --------------------------------------------------------------------------- #
# Host-side parameter preparation (run once): BN folding + block-diag relayout
# --------------------------------------------------------------------------- #
def prepare_params(params, rows, mxu_dtype=MXU_DTYPE):
    def fold(wk, bk, bnk):
        w = jnp.asarray(params[wk], jnp.float32)
        b = jnp.asarray(params[bk], jnp.float32)
        g, be = params[bnk + "_g"], params[bnk + "_b"]
        m, v = params[bnk + "_m"], params[bnk + "_v"]
        s = g / jnp.sqrt(v + BN_EPS)
        return w * s[:, None], (b - m) * s + be

    eye = jnp.eye(rows, dtype=jnp.float32)

    def branch(fc1_w, fc1_b, bn1, fc2_w, fc2_b, bn2):
        w1f, b1f = fold(fc1_w, fc1_b, bn1)          # (64, in), (64,)
        w1 = jnp.kron(eye, w1f.T)                   # (rows*in, rows*64) block-diag
        b1 = jnp.tile(b1f, rows).reshape(1, -1)     # (1, rows*64)
        w2f, b2f = fold(fc2_w, fc2_b, bn2)          # (256, rows*64), (256,)
        return (w1.astype(mxu_dtype), b1,
                w2f.T.astype(mxu_dtype), b2f.reshape(1, -1))

    w1w, b1w, w2w, b2w = branch("fc1_wt_w", "fc1_wt_b", "bn1_wt",
                                "fc2_wt_w", "fc2_wt_b", "bn2_wt")
    w1m, b1m, w2m, b2m = branch("fc1_mut_w", "fc1_mut_b", "bn1_mut",
                                "fc2_mut_w", "fc2_mut_b", "bn2_mut")

    # aggregation + bna, split into the wt/mut halves of the K=512 contraction
    waggf, baggf = fold("agg_w", "agg_b", "bna")    # (128, 512), (128,)
    wagg_t = waggf.T                                # (512, 128)
    hid2 = wagg_t.shape[0] // 2

    # fc3, lane-padded to a 128 multiple for an unmasked output store
    w3 = jnp.asarray(params["fc3_w"], jnp.float32)  # (out, 128)
    b3 = jnp.asarray(params["fc3_b"], jnp.float32)
    out_dim = w3.shape[0]
    out_pad = ((out_dim + 127) // 128) * 128
    w3_t = jnp.zeros((w3.shape[1], out_pad), jnp.float32).at[:, :out_dim].set(w3.T)
    b3_p = jnp.zeros((1, out_pad), jnp.float32).at[0, :out_dim].set(b3)

    return {
        "w1_wt": w1w, "b1_wt": b1w, "w1_mut": w1m, "b1_mut": b1m,
        "w2_wt": w2w, "b2_wt": b2w, "w2_mut": w2m, "b2_mut": b2m,
        "wagg_wt": wagg_t[:hid2].astype(mxu_dtype),
        "wagg_mut": wagg_t[hid2:].astype(mxu_dtype),
        "bagg": baggf.reshape(1, -1),
        "w3": w3_t.astype(mxu_dtype), "b3": b3_p,
    }


# --------------------------------------------------------------------------- #
# Wrapper (jit this): only a pure reshape + the pallas_call
# --------------------------------------------------------------------------- #
def tram_forward(x_wt, x_mut, kparams, *, out_dim):
    B, _, rows, in_dim = x_wt.shape
    K = rows * in_dim
    out_pad = kparams["w3"].shape[1]

    # (B, 1, rows, in) -> (B, rows*in): pure reshape, no transpose / concat.
    xw = x_wt.reshape(B, K).astype(jnp.float32)
    xm = x_mut.reshape(B, K).astype(jnp.float32)

    # Batch tiling: TM=128 "parallel" tiles when B divides 128 (amortizes
    # weight DMA, feeds both v7x TensorCores); one full-batch tile otherwise.
    TM = 128 if B % 128 == 0 else B
    grid = (B // TM,)

    weights = (kparams["w1_wt"], kparams["b1_wt"],
               kparams["w1_mut"], kparams["b1_mut"],
               kparams["w2_wt"], kparams["b2_wt"],
               kparams["w2_mut"], kparams["b2_mut"],
               kparams["wagg_wt"], kparams["wagg_mut"], kparams["bagg"],
               kparams["w3"], kparams["b3"])

    x_spec = pl.BlockSpec((TM, K), lambda i: (i, 0))
    in_specs = ([x_spec, x_spec]
                + [pl.BlockSpec(w.shape, lambda i: (0, 0)) for w in weights])
    out_specs = pl.BlockSpec((TM, out_pad), lambda i: (i, 0))

    hid1, hid2, hida = 64, 256, 128
    flops = 2 * B * (2 * K * rows * hid1 + 2 * rows * hid1 * hid2
                     + 2 * hid2 * hida + hida * out_pad)
    bytes_accessed = (2 * B * K * 4 + B * out_pad * 4
                      + sum(int(w.size) * w.dtype.itemsize for w in weights))

    out = pl.pallas_call(
        tram_kernel,
        out_shape=jax.ShapeDtypeStruct((B, out_pad), jnp.float32),
        grid=grid,
        in_specs=in_specs,
        out_specs=out_specs,
        compiler_params=pltpu.CompilerParams(
            dimension_semantics=("parallel",)),
        cost_estimate=pl.CostEstimate(
            flops=flops, transcendentals=0, bytes_accessed=bytes_accessed),
    )(xw, xm, *weights)
    return out[:, :out_dim]


# --------------------------------------------------------------------------- #
# Pure-JAX reference (mirrors the PyTorch eval-mode forward, BN not folded)
# --------------------------------------------------------------------------- #
def tram_reference(x_wt, x_mut, params):
    def lin(x, w, b):
        return x @ jnp.asarray(w, jnp.float32).T + jnp.asarray(b, jnp.float32)

    def bn(x, prefix):
        g, be = params[prefix + "_g"], params[prefix + "_b"]
        m, v = params[prefix + "_m"], params[prefix + "_v"]
        return (x - m) * (g / jnp.sqrt(v + BN_EPS)) + be

    B, _, rows, in_dim = x_wt.shape
    xw = x_wt.reshape(B, rows, in_dim)
    xm = x_mut.reshape(B, rows, in_dim)
    o1w = _leaky_relu(bn(lin(xw, params["fc1_wt_w"], params["fc1_wt_b"]), "bn1_wt"))
    o1m = _leaky_relu(bn(lin(xm, params["fc1_mut_w"], params["fc1_mut_b"]), "bn1_mut"))
    o1w = o1w.reshape(B, -1)
    o1m = o1m.reshape(B, -1)
    o2w = _leaky_relu(bn(lin(o1w, params["fc2_wt_w"], params["fc2_wt_b"]), "bn2_wt"))
    o2m = _leaky_relu(bn(lin(o1m, params["fc2_mut_w"], params["fc2_mut_b"]), "bn2_mut"))
    comb = jnp.concatenate([o2w, o2m], axis=1)
    agg = _leaky_relu(bn(lin(comb, params["agg_w"], params["agg_b"]), "bna"))
    return lin(agg, params["fc3_w"], params["fc3_b"])


# --------------------------------------------------------------------------- #
# Parameter initialization (torch layout)
# --------------------------------------------------------------------------- #
def init_params(key, input_dim, rows, out_dim):
    keys = iter(jax.random.split(key, 32))
    s = 0.05

    def w(shape):
        return jax.random.normal(next(keys), shape, jnp.float32) * s

    def bn(d, c):
        d.update({
            "_g": 1.0 + 0.1 * jax.random.normal(next(keys), (c,), jnp.float32),
            "_b": 0.05 * jax.random.normal(next(keys), (c,), jnp.float32),
            "_m": 0.05 * jax.random.normal(next(keys), (c,), jnp.float32),
            "_v": 1.0 + 0.1 * jnp.abs(jax.random.normal(next(keys), (c,), jnp.float32)),
        })
        return d

    p = {
        "fc1_wt_w": w((64, input_dim)),      "fc1_wt_b": w((64,)),
        "fc1_mut_w": w((64, input_dim)),     "fc1_mut_b": w((64,)),
        "fc2_wt_w": w((256, 64 * rows)),     "fc2_wt_b": w((256,)),
        "fc2_mut_w": w((256, 64 * rows)),    "fc2_mut_b": w((256,)),
        "agg_w": w((128, 512)),              "agg_b": w((128,)),
        "fc3_w": w((out_dim, 128)),          "fc3_b": w((out_dim,)),
    }
    for name, c in (("bn1_wt", 64), ("bn1_mut", 64),
                    ("bn2_wt", 256), ("bn2_mut", 256), ("bna", 128)):
        p.update({name + k: v for k, v in bn({}, c).items()})
    return p


if __name__ == "__main__":
    B, rows, input_dim, out_dim = 2, 8, 32, 4

    key = jax.random.PRNGKey(0)
    kx1, kx2, kp = jax.random.split(key, 3)
    x_wt = jax.random.normal(kx1, (B, 1, rows, input_dim), jnp.float32)
    x_mut = jax.random.normal(kx2, (B, 1, rows, input_dim), jnp.float32)
    params = init_params(kp, input_dim, rows, out_dim)

    # One-time weight folding / block-diag relayout (out of the per-call path).
    kparams = prepare_params(params, rows)

    fwd = jax.jit(functools.partial(tram_forward, out_dim=out_dim))
    out = jax.block_until_ready(fwd(x_wt, x_mut, kparams))

    ref = tram_reference(x_wt, x_mut, params)
    assert out.shape == (B, out_dim), out.shape
    # bf16 MXU operands with f32 accumulation -> small numeric delta vs f32 ref.
    assert jnp.allclose(out, ref, atol=2e-2, rtol=2e-2), (out, ref)

    print("KERNEL_OK")
</pallas_src>

<mosaic_0001>
module attributes {stable_mosaic.version = 11 : i64} {
  func.func @tram_kernel(%arg0: i32, %arg1: memref<2x256xf32, #tpu.memory_space<vmem>>, %arg2: memref<2x256xf32, #tpu.memory_space<vmem>>, %arg3: memref<256x512xbf16, #tpu.memory_space<vmem>>, %arg4: memref<1x512xf32, #tpu.memory_space<vmem>>, %arg5: memref<256x512xbf16, #tpu.memory_space<vmem>>, %arg6: memref<1x512xf32, #tpu.memory_space<vmem>>, %arg7: memref<512x256xbf16, #tpu.memory_space<vmem>>, %arg8: memref<1x256xf32, #tpu.memory_space<vmem>>, %arg9: memref<512x256xbf16, #tpu.memory_space<vmem>>, %arg10: memref<1x256xf32, #tpu.memory_space<vmem>>, %arg11: memref<256x128xbf16, #tpu.memory_space<vmem>>, %arg12: memref<256x128xbf16, #tpu.memory_space<vmem>>, %arg13: memref<1x128xf32, #tpu.memory_space<vmem>>, %arg14: memref<128x128xbf16, #tpu.memory_space<vmem>>, %arg15: memref<1x128xf32, #tpu.memory_space<vmem>>, %arg16: memref<2x128xf32, #tpu.memory_space<vmem>>) attributes {dimension_semantics = [#tpu.dimension_semantics<parallel>], iteration_bounds = array<i64: 1>, scalar_prefetch = 0 : i64, scratch_operands = 0 : i64, tpu.core_type = #tpu.core_type<tc>, window_params = [{transform_indices = @transform_0, window_bounds = array<i64: 2, 256>}, {transform_indices = @transform_1, window_bounds = array<i64: 2, 256>}, {pipeline_mode = #tpu.pipeline_mode<synchronous>, transform_indices = @transform_2, window_bounds = array<i64: 256, 512>}, {pipeline_mode = #tpu.pipeline_mode<synchronous>, transform_indices = @transform_3, window_bounds = array<i64: 1, 512>}, {pipeline_mode = #tpu.pipeline_mode<synchronous>, transform_indices = @transform_4, window_bounds = array<i64: 256, 512>}, {pipeline_mode = #tpu.pipeline_mode<synchronous>, transform_indices = @transform_5, window_bounds = array<i64: 1, 512>}, {pipeline_mode = #tpu.pipeline_mode<synchronous>, transform_indices = @transform_6, window_bounds = array<i64: 512, 256>}, {pipeline_mode = #tpu.pipeline_mode<synchronous>, transform_indices = @transform_7, window_bounds = array<i64: 1, 256>}, {pipeline_mode = #tpu.pipeline_mode<synchronous>, transform_indices = @transform_8, window_bounds = array<i64: 512, 256>}, {pipeline_mode = #tpu.pipeline_mode<synchronous>, transform_indices = @transform_9, window_bounds = array<i64: 1, 256>}, {pipeline_mode = #tpu.pipeline_mode<synchronous>, transform_indices = @transform_10, window_bounds = array<i64: 256, 128>}, {pipeline_mode = #tpu.pipeline_mode<synchronous>, transform_indices = @transform_11, window_bounds = array<i64: 256, 128>}, {pipeline_mode = #tpu.pipeline_mode<synchronous>, transform_indices = @transform_12, window_bounds = array<i64: 1, 128>}, {pipeline_mode = #tpu.pipeline_mode<synchronous>, transform_indices = @transform_13, window_bounds = array<i64: 128, 128>}, {pipeline_mode = #tpu.pipeline_mode<synchronous>, transform_indices = @transform_14, window_bounds = array<i64: 1, 128>}, {transform_indices = @transform_15, window_bounds = array<i64: 2, 128>}]} {
    %c0 = arith.constant 0 : index
    %c0_0 = arith.constant 0 : index
    %0 = vector.load %arg1[%c0, %c0_0] : memref<2x256xf32, #tpu.memory_space<vmem>>, vector<2x256xf32>
    %1 = arith.truncf %0 : vector<2x256xf32> to vector<2x256xbf16>
    %c0_1 = arith.constant 0 : index
    %c0_2 = arith.constant 0 : index
    %2 = vector.load %arg3[%c0_1, %c0_2] : memref<256x512xbf16, #tpu.memory_space<vmem>>, vector<256x512xbf16>
    %cst = arith.constant dense<0.000000e+00> : vector<2x512xf32>
    %3 = tpu.matmul %1, %2, %cst {dimension_numbers = #tpu.dot_dimension_numbers<[1], [0], [0], [1], [0, 0, 1, 1], [], []>} : vector<2x256xbf16>, vector<256x512xbf16>, vector<2x512xf32> -> vector<2x512xf32>
    %c0_3 = arith.constant 0 : index
    %c0_4 = arith.constant 0 : index
    %4 = vector.load %arg4[%c0_3, %c0_4] : memref<1x512xf32, #tpu.memory_space<vmem>>, vector<1x512xf32>
    %5 = vector.broadcast %4 : vector<1x512xf32> to vector<2x512xf32>
    %6 = arith.addf %3, %5 : vector<2x512xf32>
    %cst_5 = arith.constant 0.000000e+00 : f32
    %7 = vector.broadcast %cst_5 : f32 to vector<2x512xf32>
    %8 = arith.cmpf ogt, %6, %7 : vector<2x512xf32>
    %cst_6 = arith.constant 0.00999999977 : f32
    %9 = vector.broadcast %cst_6 : f32 to vector<2x512xf32>
    %10 = arith.mulf %9, %6 : vector<2x512xf32>
    %11 = arith.select %8, %6, %10 : vector<2x512xi1>, vector<2x512xf32>
    %c0_7 = arith.constant 0 : index
    %c0_8 = arith.constant 0 : index
    %12 = vector.load %arg2[%c0_7, %c0_8] : memref<2x256xf32, #tpu.memory_space<vmem>>, vector<2x256xf32>
    %13 = arith.truncf %12 : vector<2x256xf32> to vector<2x256xbf16>
    %c0_9 = arith.constant 0 : index
    %c0_10 = arith.constant 0 : index
    %14 = vector.load %arg5[%c0_9, %c0_10] : memref<256x512xbf16, #tpu.memory_space<vmem>>, vector<256x512xbf16>
    %cst_11 = arith.constant dense<0.000000e+00> : vector<2x512xf32>
    %15 = tpu.matmul %13, %14, %cst_11 {dimension_numbers = #tpu.dot_dimension_numbers<[1], [0], [0], [1], [0, 0, 1, 1], [], []>} : vector<2x256xbf16>, vector<256x512xbf16>, vector<2x512xf32> -> vector<2x512xf32>
    %c0_12 = arith.constant 0 : index
    %c0_13 = arith.constant 0 : index
    %16 = vector.load %arg6[%c0_12, %c0_13] : memref<1x512xf32, #tpu.memory_space<vmem>>, vector<1x512xf32>
    %17 = vector.broadcast %16 : vector<1x512xf32> to vector<2x512xf32>
    %18 = arith.addf %15, %17 : vector<2x512xf32>
    %cst_14 = arith.constant 0.000000e+00 : f32
    %19 = vector.broadcast %cst_14 : f32 to vector<2x512xf32>
    %20 = arith.cmpf ogt, %18, %19 : vector<2x512xf32>
    %cst_15 = arith.constant 0.00999999977 : f32
    %21 = vector.broadcast %cst_15 : f32 to vector<2x512xf32>
    %22 = arith.mulf %21, %18 : vector<2x512xf32>
    %23 = arith.select %20, %18, %22 : vector<2x512xi1>, vector<2x512xf32>
    %24 = arith.truncf %11 : vector<2x512xf32> to vector<2x512xbf16>
    %c0_16 = arith.constant 0 : index
    %c0_17 = arith.constant 0 : index
    %25 = vector.load %arg7[%c0_16, %c0_17] : memref<512x256xbf16, #tpu.memory_space<vmem>>, vector<512x256xbf16>
    %cst_18 = arith.constant dense<0.000000e+00> : vector<2x256xf32>
    %26 = tpu.matmul %24, %25, %cst_18 {dimension_numbers = #tpu.dot_dimension_numbers<[1], [0], [0], [1], [0, 0, 1, 1], [], []>} : vector<2x512xbf16>, vector<512x256xbf16>, vector<2x256xf32> -> vector<2x256xf32>
    %c0_19 = arith.constant 0 : index
    %c0_20 = arith.constant 0 : index
    %27 = vector.load %arg8[%c0_19, %c0_20] : memref<1x256xf32, #tpu.memory_space<vmem>>, vector<1x256xf32>
    %28 = vector.broadcast %27 : vector<1x256xf32> to vector<2x256xf32>
    %29 = arith.addf %26, %28 : vector<2x256xf32>
    %cst_21 = arith.constant 0.000000e+00 : f32
    %30 = vector.broadcast %cst_21 : f32 to vector<2x256xf32>
    %31 = arith.cmpf ogt, %29, %30 : vector<2x256xf32>
    %cst_22 = arith.constant 0.00999999977 : f32
    %32 = vector.broadcast %cst_22 : f32 to vector<2x256xf32>
    %33 = arith.mulf %32, %29 : vector<2x256xf32>
    %34 = arith.select %31, %29, %33 : vector<2x256xi1>, vector<2x256xf32>
    %35 = arith.truncf %23 : vector<2x512xf32> to vector<2x512xbf16>
    %c0_23 = arith.constant 0 : index
    %c0_24 = arith.constant 0 : index
    %36 = vector.load %arg9[%c0_23, %c0_24] : memref<512x256xbf16, #tpu.memory_space<vmem>>, vector<512x256xbf16>
    %cst_25 = arith.constant dense<0.000000e+00> : vector<2x256xf32>
    %37 = tpu.matmul %35, %36, %cst_25 {dimension_numbers = #tpu.dot_dimension_numbers<[1], [0], [0], [1], [0, 0, 1, 1], [], []>} : vector<2x512xbf16>, vector<512x256xbf16>, vector<2x256xf32> -> vector<2x256xf32>
    %c0_26 = arith.constant 0 : index
    %c0_27 = arith.constant 0 : index
    %38 = vector.load %arg10[%c0_26, %c0_27] : memref<1x256xf32, #tpu.memory_space<vmem>>, vector<1x256xf32>
    %39 = vector.broadcast %38 : vector<1x256xf32> to vector<2x256xf32>
    %40 = arith.addf %37, %39 : vector<2x256xf32>
    %cst_28 = arith.constant 0.000000e+00 : f32
    %41 = vector.broadcast %cst_28 : f32 to vector<2x256xf32>
    %42 = arith.cmpf ogt, %40, %41 : vector<2x256xf32>
    %cst_29 = arith.constant 0.00999999977 : f32
    %43 = vector.broadcast %cst_29 : f32 to vector<2x256xf32>
    %44 = arith.mulf %43, %40 : vector<2x256xf32>
    %45 = arith.select %42, %40, %44 : vector<2x256xi1>, vector<2x256xf32>
    %46 = arith.truncf %34 : vector<2x256xf32> to vector<2x256xbf16>
    %c0_30 = arith.constant 0 : index
    %c0_31 = arith.constant 0 : index
    %47 = vector.load %arg11[%c0_30, %c0_31] : memref<256x128xbf16, #tpu.memory_space<vmem>>, vector<256x128xbf16>
    %cst_32 = arith.constant dense<0.000000e+00> : vector<2x128xf32>
    %48 = tpu.matmul %46, %47, %cst_32 {dimension_numbers = #tpu.dot_dimension_numbers<[1], [0], [0], [1], [0, 0, 1, 1], [], []>} : vector<2x256xbf16>, vector<256x128xbf16>, vector<2x128xf32> -> vector<2x128xf32>
    %49 = arith.truncf %45 : vector<2x256xf32> to vector<2x256xbf16>
    %c0_33 = arith.constant 0 : index
    %c0_34 = arith.constant 0 : index
    %50 = vector.load %arg12[%c0_33, %c0_34] : memref<256x128xbf16, #tpu.memory_space<vmem>>, vector<256x128xbf16>
    %cst_35 = arith.constant dense<0.000000e+00> : vector<2x128xf32>
    %51 = tpu.matmul %49, %50, %cst_35 {dimension_numbers = #tpu.dot_dimension_numbers<[1], [0], [0], [1], [0, 0, 1, 1], [], []>} : vector<2x256xbf16>, vector<256x128xbf16>, vector<2x128xf32> -> vector<2x128xf32>
    %52 = arith.addf %48, %51 : vector<2x128xf32>
    %c0_36 = arith.constant 0 : index
    %c0_37 = arith.constant 0 : index
    %53 = vector.load %arg13[%c0_36, %c0_37] : memref<1x128xf32, #tpu.memory_space<vmem>>, vector<1x128xf32>
    %54 = vector.broadcast %53 : vector<1x128xf32> to vector<2x128xf32>
    %55 = arith.addf %52, %54 : vector<2x128xf32>
    %cst_38 = arith.constant 0.000000e+00 : f32
    %56 = vector.broadcast %cst_38 : f32 to vector<2x128xf32>
    %57 = arith.cmpf ogt, %55, %56 : vector<2x128xf32>
    %cst_39 = arith.constant 0.00999999977 : f32
    %58 = vector.broadcast %cst_39 : f32 to vector<2x128xf32>
    %59 = arith.mulf %58, %55 : vector<2x128xf32>
    %60 = arith.select %57, %55, %59 : vector<2x128xi1>, vector<2x128xf32>
    %61 = arith.truncf %60 : vector<2x128xf32> to vector<2x128xbf16>
    %c0_40 = arith.constant 0 : index
    %c0_41 = arith.constant 0 : index
    %62 = vector.load %arg14[%c0_40, %c0_41] : memref<128x128xbf16, #tpu.memory_space<vmem>>, vector<128x128xbf16>
    %cst_42 = arith.constant dense<0.000000e+00> : vector<2x128xf32>
    %63 = tpu.matmul %61, %62, %cst_42 {dimension_numbers = #tpu.dot_dimension_numbers<[1], [0], [0], [1], [0, 0, 1, 1], [], []>} : vector<2x128xbf16>, vector<128x128xbf16>, vector<2x128xf32> -> vector<2x128xf32>
    %c0_43 = arith.constant 0 : index
    %c0_44 = arith.constant 0 : index
    %64 = vector.load %arg15[%c0_43, %c0_44] : memref<1x128xf32, #tpu.memory_space<vmem>>, vector<1x128xf32>
    %65 = vector.broadcast %64 : vector<1x128xf32> to vector<2x128xf32>
    %66 = arith.addf %63, %65 : vector<2x128xf32>
    %c0_45 = arith.constant 0 : index
    %c0_46 = arith.constant 0 : index
    %67 = vector.load %arg16[%c0_45, %c0_46] : memref<2x128xf32, #tpu.memory_space<vmem>>, vector<2x128xf32>
    tpu.vector_store %arg16[%c0_45, %c0_46], %66 {strides = array<i32>} : memref<2x128xf32, #tpu.memory_space<vmem>>, vector<2x128xf32>,
    return
  }
  func.func @transform_0(%arg0: i32) -> (i32, i32) {
    %c0_i32 = arith.constant 0 : i32
    %c0_i32_0 = arith.constant 0 : i32
    return %arg0, %c0_i32 : i32, i32
  }
  func.func @transform_1(%arg0: i32) -> (i32, i32) {
    %c0_i32 = arith.constant 0 : i32
    %c0_i32_0 = arith.constant 0 : i32
    return %arg0, %c0_i32 : i32, i32
  }
  func.func @transform_2(%arg0: i32) -> (i32, i32) {
    %c0_i32 = arith.constant 0 : i32
    %c0_i32_0 = arith.constant 0 : i32
    %c0_i32_1 = arith.constant 0 : i32
    return %c0_i32, %c0_i32_0 : i32, i32
  }
  func.func @transform_3(%arg0: i32) -> (i32, i32) {
    %c0_i32 = arith.constant 0 : i32
    %c0_i32_0 = arith.constant 0 : i32
    %c0_i32_1 = arith.constant 0 : i32
    return %c0_i32, %c0_i32_0 : i32, i32
  }
  func.func @transform_4(%arg0: i32) -> (i32, i32) {
    %c0_i32 = arith.constant 0 : i32
    %c0_i32_0 = arith.constant 0 : i32
    %c0_i32_1 = arith.constant 0 : i32
    return %c0_i32, %c0_i32_0 : i32, i32
  }
  func.func @transform_5(%arg0: i32) -> (i32, i32) {
    %c0_i32 = arith.constant 0 : i32
    %c0_i32_0 = arith.constant 0 : i32
    %c0_i32_1 = arith.constant 0 : i32
    return %c0_i32, %c0_i32_0 : i32, i32
  }
  func.func @transform_6(%arg0: i32) -> (i32, i32) {
    %c0_i32 = arith.constant 0 : i32
    %c0_i32_0 = arith.constant 0 : i32
    %c0_i32_1 = arith.constant 0 : i32
    return %c0_i32, %c0_i32_0 : i32, i32
  }
  func.func @transform_7(%arg0: i32) -> (i32, i32) {
    %c0_i32 = arith.constant 0 : i32
    %c0_i32_0 = arith.constant 0 : i32
    %c0_i32_1 = arith.constant 0 : i32
    return %c0_i32, %c0_i32_0 : i32, i32
  }
  func.func @transform_8(%arg0: i32) -> (i32, i32) {
    %c0_i32 = arith.constant 0 : i32
    %c0_i32_0 = arith.constant 0 : i32
    %c0_i32_1 = arith.constant 0 : i32
    return %c0_i32, %c0_i32_0 : i32, i32
  }
  func.func @transform_9(%arg0: i32) -> (i32, i32) {
    %c0_i32 = arith.constant 0 : i32
    %c0_i32_0 = arith.constant 0 : i32
    %c0_i32_1 = arith.constant 0 : i32
    return %c0_i32, %c0_i32_0 : i32, i32
  }
  func.func @transform_10(%arg0: i32) -> (i32, i32) {
    %c0_i32 = arith.constant 0 : i32
    %c0_i32_0 = arith.constant 0 : i32
    %c0_i32_1 = arith.constant 0 : i32
    return %c0_i32, %c0_i32_0 : i32, i32
  }
  func.func @transform_11(%arg0: i32) -> (i32, i32) {
    %c0_i32 = arith.constant 0 : i32
    %c0_i32_0 = arith.constant 0 : i32
    %c0_i32_1 = arith.constant 0 : i32
    return %c0_i32, %c0_i32_0 : i32, i32
  }
  func.func @transform_12(%arg0: i32) -> (i32, i32) {
    %c0_i32 = arith.constant 0 : i32
    %c0_i32_0 = arith.constant 0 : i32
    %c0_i32_1 = arith.constant 0 : i32
    return %c0_i32, %c0_i32_0 : i32, i32
  }
  func.func @transform_13(%arg0: i32) -> (i32, i32) {
    %c0_i32 = arith.constant 0 : i32
    %c0_i32_0 = arith.constant 0 : i32
    %c0_i32_1 = arith.constant 0 : i32
    return %c0_i32, %c0_i32_0 : i32, i32
  }
  func.func @transform_14(%arg0: i32) -> (i32, i32) {
    %c0_i32 = arith.constant 0 : i32
    %c0_i32_0 = arith.constant 0 : i32
    %c0_i32_1 = arith.constant 0 : i32
    return %c0_i32, %c0_i32_0 : i32, i32
  }
  func.func @transform_15(%arg0: i32) -> (i32, i32) {
    %c0_i32 = arith.constant 0 : i32
    %c0_i32_0 = arith.constant 0 : i32
    return %arg0, %c0_i32 : i32, i32
  }
}

</mosaic_0001>

<bundles_post_ra>
// kernel: tram_forward.1
= control target key start
LH: loop header
LB: loop body
LE: loop exit
PB: predicated region body
PF: predicated region fallthrough
CT: control target
= control target key end

     0   :  { %s4525_s0 = inlined_call_operand.vmem [shape: f32[2,256], index: 0, kind: input, shape index: {}]   ;;  %s4526_s1 = inlined_call_operand.vmem [shape: f32[2,256], index: 1, kind: input, shape index: {}]   ;;  %s4527_s2 = inlined_call_operand.hbm [shape: bf16[256,512], index: 2, kind: input, shape index: {}]   ;;  %s4528_s3 = inlined_call_operand.vmem [shape: f32[1,512], index: 3, kind: input, shape index: {}]   ;;  %s4529_s4 = inlined_call_operand.hbm [shape: bf16[256,512], index: 4, kind: input, shape index: {}]   ;;  %s4530_s5 = inlined_call_operand.vmem [shape: f32[1,512], index: 5, kind: input, shape index: {}]   ;;  %s4531_s6 = inlined_call_operand.hbm [shape: bf16[512,256], index: 6, kind: input, shape index: {}]   ;;  %s4532_s7 = inlined_call_operand.vmem [shape: f32[1,256], index: 7, kind: input, shape index: {}]   ;;  %s4533_s8 = inlined_call_operand.hbm [shape: bf16[512,256], index: 8, kind: input, shape index: {}]   ;;  %s4534_s9 = inlined_call_operand.vmem [shape: f32[1,256], index: 9, kind: input, shape index: {}]   ;;  %s4535_s10 = inlined_call_operand.hbm [shape: bf16[256,128], index: 10, kind: input, shape index: {}]   ;;  %s4536_s11 = inlined_call_operand.hbm [shape: bf16[256,128], index: 11, kind: input, shape index: {}]   ;;  %s4537_s12 = inlined_call_operand.vmem [shape: f32[1,128], index: 12, kind: input, shape index: {}]   ;;  %s4538_s13 = inlined_call_operand.hbm [shape: bf16[128,128], index: 13, kind: input, shape index: {}]   ;;  %s4539_s14 = inlined_call_operand.vmem [shape: f32[1,128], index: 14, kind: input, shape index: {}]   ;;  %s4540_s15 = inlined_call_operand.hbm [shape: f32[2,128], index: 15, kind: output, shape index: {}]  }
   0x1   :  { %4541 = sst [smem:[#allocation20_spill]] %s4539_s14 }
   0x2   :  { %4542 = sst [smem:[#allocation21_spill]] %s4540_s15 }
   0x3   :  { %20 = vsyncpa [#allocation3], 0 }
   0x4   :  { %21 = vsyncpa [#allocation6], 0 }
   0x5   :  { %22 = vsyncpa [#allocation9], 0 }
   0x6   :  { %23 = vsyncpa [#allocation12], 0 }
   0x7   :  { %24 = vsyncpa [#allocation4], 0  ;;  %s48_s20 = sshll.u32 %s4529_s4, 4  ;;  %s4327_s21 = smov [#allocation5]   ;;  %s49_s20 = int_to_ptr.hbm [resolvable:$true] %s48_s20 }
   0x8   :  { %s50_s22 = sshll.u32 %s4327_s21, 4  ;;  %s4328_s23 = smov 256   ;;  %s51_s22 = int_to_ptr.vmem [resolvable:$true] %s50_s22 }
   0x9   :  { %s4329_s24 = smov 16   ;;  %s78_s27 = sshll.u32 %s4533_s8, 4  ;;  %s79_s27 = int_to_ptr.hbm [resolvable:$true] %s78_s27 }
   0xa   :  { %56 = dma.hbm_to_vmem [thread:$0]  %s49_s20, 8192, %s51_s22, [#allocation6], %s4328_s23, %s4328_s23, %s4329_s24  }
   0xb   :  { %s4330_s28 = smov [#allocation8]   ;;  %s4331_s30 = smov 128  }
   0xc   :  { %s80_s29 = sshll.u32 %s4330_s28, 4  ;;  %s4332_s16 = smov 8   ;;  %s81_s29 = int_to_ptr.vmem [resolvable:$true] %s80_s29 }
   0xd   :  { %86 = dma.hbm_to_vmem [thread:$0]  %s79_s27, 8192, %s81_s29, [#allocation9], %s4331_s30, %s4331_s30, %s4332_s16  }
   0xe   :  { %s106_s18 = sshll.u32 %s4536_s11, 4  ;;  %s4333_s19 = smov [#allocation11]   ;;  %s107_s18 = int_to_ptr.hbm [resolvable:$true] %s106_s18 }
   0xf   :  { %s108_s21 = sshll.u32 %s4333_s19, 4  ;;  %s33_s25 = sshll.u32 %s4527_s2, 4  ;;  %s109_s21 = int_to_ptr.vmem [resolvable:$true] %s108_s21  ;;  %s34_s25 = int_to_ptr.hbm [resolvable:$true] %s33_s25 }
  0x10   :  { %s4334_s8 = smov 64   ;;  %s4335_s26 = smov 4  }
  0x11   :  { %114 = dma.hbm_to_vmem [thread:$0]  %s107_s18, 2048, %s109_s21, [#allocation12], %s4334_s8, %s4334_s8, %s4335_s26  }
  0x12   :  { %s4336_s28 = smov [#allocation2]   ;;  %s63_s29 = sshll.u32 %s4531_s6, 4  ;;  %s64_s29 = int_to_ptr.hbm [resolvable:$true] %s63_s29 }
  0x13   :  { %s35_s15 = sshll.u32 %s4336_s28, 4  ;;  %s93_s4 = sshll.u32 %s4535_s10, 4  ;;  %s36_s15 = int_to_ptr.vmem [resolvable:$true] %s35_s15  ;;  %s94_s4 = int_to_ptr.hbm [resolvable:$true] %s93_s4 }
  0x14   :  { %41 = dma.hbm_to_vmem [thread:$0]  %s34_s25, 8192, %s36_s15, [#allocation3], %s4328_s23, %s4328_s23, %s4329_s24  }
  0x15   :  { %s4337_s19 = smov [#allocation7]   ;;  %s4338_s2 = smov [#allocation10]  }
  0x16   :  { %s65_s20 = sshll.u32 %s4337_s19, 4  ;;  %s95_s18 = sshll.u32 %s4338_s2, 4  ;;  %s66_s20 = int_to_ptr.vmem [resolvable:$true] %s65_s20  ;;  %s96_s18 = int_to_ptr.vmem [resolvable:$true] %s95_s18 }
  0x17   :  { %71 = dma.hbm_to_vmem [thread:$0]  %s64_s29, 8192, %s66_s20, [#allocation6], %s4331_s30, %s4331_s30, %s4332_s16  }
  0x18   :  { %s121_s28 = sshll.u32 %s4538_s13, 4  ;;  %s4339_s6 = smov [#allocation13]   ;;  %s122_s28 = int_to_ptr.hbm [resolvable:$true] %s121_s28 }
  0x19   :  { %101 = dma.hbm_to_vmem [thread:$0]  %s94_s4, 2048, %s96_s18, [#allocation9], %s4334_s8, %s4334_s8, %s4335_s26  }
  0x1a   :  { %s123_s14 = sshll.u32 %s4339_s6, 4  ;;  %s124_s14 = int_to_ptr.vmem [resolvable:$true] %s123_s14 }
  0x1b   :  { %129 = dma.hbm_to_vmem [thread:$0]  %s122_s28, 1024, %s124_s14, [#allocation12], %s4334_s8, %s4334_s8, %s4335_s26  }
  0x1c   :  { %4317 = dma.done.wait [#allocation3], 8192  }
  0x1d   :  { %4318 = vsyncadd [#allocation3], 4294959104 }
  0x1e   :  { %4319 = dma.done.wait [#allocation6], 16384  }
  0x1f   :  { %4320 = vsyncadd [#allocation6], 4294950912 }
  0x20   :  { %4321 = dma.done.wait [#allocation9], 10240  }
  0x21   :  { %4322 = vsyncadd [#allocation9], 4294957056 }
  0x22   :  { %4323 = dma.done.wait [#allocation12], 3072  }
  0x23   :  { %4324 = vsyncadd [#allocation12], 4294964224  ;;  %v2743_v0 = vld [vmem:[#allocation2 + $0xe0] sm:$0xf]  ;;  %v3843_v1 = vld [vmem:[#allocation2 + $0xec] sm:$0xf0] }
  0x24   :  { %v2871_v2 = vld [vmem:[#allocation2 + $0x1e0] sm:$0xf]  ;;  %v2744_v3 = vor.u32 %v3843_v1, %v2743_v0  ;;  %v3875_v4 = vld [vmem:[#allocation2 + $0x1ec] sm:$0xf0]  ;;  %v3841_v5 = vld [vmem:[#allocation2 + $0xe4] sm:$0xf] }
  0x25   :  { %v2745_v6 = vld [vmem:[#allocation2 + $0xf0] sm:$0xf0]  ;;  %v2872_v7 = vor.u32 %v3875_v4, %v2871_v2  ;;  %v3873_v9 = vld [vmem:[#allocation2 + $0x1e4] sm:$0xf]  ;;  %v2727_v11 = vld [vmem:[#allocation2 + $0xc0] sm:$0xf] }
  0x26   :  { %v2748_v8 = vor.u32 %v3841_v5, %v2745_v6  ;;  %v2873_v10 = vld [vmem:[#allocation2 + $0x1f0] sm:$0xf0]  ;;  %563 = vmatpush.bf16.msra.mxu0 %v2744_v3  ;;  %v3839_v13 = vld [vmem:[#allocation2 + $0xcc] sm:$0xf0]  ;;  %v2855_v14 = vld [vmem:[#allocation2 + $0x1c0] sm:$0xf] }
  0x27   :  { %v2876_v12 = vor.u32 %v3873_v9, %v2873_v10  ;;  %v3871_v15 = vld [vmem:[#allocation2 + $0x1cc] sm:$0xf0]  ;;  %576 = vmatpush.bf16.msra.mxu1 %v2872_v7  ;;  %v2728_v16 = vor.u32 %v3839_v13, %v2727_v11  ;;  %v3837_v18 = vld [vmem:[#allocation2 + $0xc4] sm:$0xf]  ;;  %v2729_v19 = vld [vmem:[#allocation2 + $0xd0] sm:$0xf0] }
  0x28   :  { %589 = vmatpush.bf16.msra.mxu2 %v2748_v8  ;;  %v2856_v17 = vor.u32 %v3871_v15, %v2855_v14  ;;  %v3869_v20 = vld [vmem:[#allocation2 + $0x1c4] sm:$0xf]  ;;  %v2732_v21 = vor.u32 %v3837_v18, %v2729_v19  ;;  %v2857_v22 = vld [vmem:[#allocation2 + $0x1d0] sm:$0xf0]  ;;  %v2711_v23 = vld [vmem:[#allocation2 + $0xa0] sm:$0xf] }
  0x29   :  { %602 = vmatpush.bf16.msra.mxu3 %v2876_v12  ;;  %v3835_v24 = vld [vmem:[#allocation2 + $0xac] sm:$0xf0]  ;;  %v2860_v25 = vor.u32 %v3869_v20, %v2857_v22  ;;  %v2839_v26 = vld [vmem:[#allocation2 + $0x1a0] sm:$0xf]  ;;  %v3833_v28 = vld [vmem:[#allocation2 + $0xa4] sm:$0xf] }
  0x2a   :  { %v3867_v27 = vld [vmem:[#allocation2 + $0x1ac] sm:$0xf0]  ;;  %564 = vmatpush.bf16.msra.mxu0 %v2728_v16  ;;  %v2712_v29 = vor.u32 %v3835_v24, %v2711_v23  ;;  %v2713_v30 = vld [vmem:[#allocation2 + $0xb0] sm:$0xf0]  ;;  %v3865_v31 = vld [vmem:[#allocation2 + $0x1a4] sm:$0xf] }
  0x2b   :  { %v2841_v32 = vld [vmem:[#allocation2 + $0x1b0] sm:$0xf0]  ;;  %577 = vmatpush.bf16.msra.mxu1 %v2856_v17  ;;  %v2840_v33 = vor.u32 %v3867_v27, %v2839_v26  ;;  %v2716_v34 = vor.u32 %v3833_v28, %v2713_v30  ;;  %v2695_v35 = vld [vmem:[#allocation2 + $0x80] sm:$0xf]  ;;  %v3831_v36 = vld [vmem:[#allocation2 + $0x8c] sm:$0xf0] }
  0x2c   :  { %590 = vmatpush.bf16.msra.mxu2 %v2732_v21  ;;  %v2823_v37 = vld [vmem:[#allocation2 + $0x180] sm:$0xf]  ;;  %v2844_v38 = vor.u32 %v3865_v31, %v2841_v32  ;;  %v3863_v39 = vld [vmem:[#allocation2 + $0x18c] sm:$0xf0]  ;;  %v3829_v40 = vld [vmem:[#allocation2 + $0x84] sm:$0xf]  ;;  %v2696_v44 = vor.u32 %v3831_v36, %v2695_v35 }
  0x2d   :  { %603 = vmatpush.bf16.msra.mxu3 %v2860_v25  ;;  %v2697_v41 = vld [vmem:[#allocation2 + $0x90] sm:$0xf0]  ;;  %v3861_v42 = vld [vmem:[#allocation2 + $0x184] sm:$0xf]  ;;  %v2824_v45 = vor.u32 %v3863_v39, %v2823_v37  ;;  %v2679_v47 = vld [vmem:[#allocation2 + $0x60] sm:$0xf] }
  0x2e   :  { %v2825_v43 = vld [vmem:[#allocation2 + $0x190] sm:$0xf0]  ;;  %565 = vmatpush.bf16.msra.mxu0 %v2712_v29  ;;  %v2700_v46 = vor.u32 %v3829_v40, %v2697_v41  ;;  %v3827_v48 = vld [vmem:[#allocation2 + $0x6c] sm:$0xf0]  ;;  %v2807_v49 = vld [vmem:[#allocation2 + $0x160] sm:$0xf] }
  0x2f   :  { %578 = vmatpush.bf16.msra.mxu1 %v2840_v33  ;;  %v2828_v50 = vor.u32 %v3861_v42, %v2825_v43  ;;  %v3859_v51 = vld [vmem:[#allocation2 + $0x16c] sm:$0xf0]  ;;  %v3825_v52 = vld [vmem:[#allocation2 + $0x64] sm:$0xf]  ;;  %v2681_v53 = vld [vmem:[#allocation2 + $0x70] sm:$0xf0]  ;;  %v2680_v56 = vor.u32 %v3827_v48, %v2679_v47 }
  0x30   :  { %591 = vmatpush.bf16.msra.mxu2 %v2716_v34  ;;  %v3857_v54 = vld [vmem:[#allocation2 + $0x164] sm:$0xf]  ;;  %v2809_v55 = vld [vmem:[#allocation2 + $0x170] sm:$0xf0]  ;;  %v2808_v57 = vor.u32 %v3859_v51, %v2807_v49  ;;  %v2684_v58 = vor.u32 %v3825_v52, %v2681_v53  ;;  %v2663_v59 = vld [vmem:[#allocation2 + $0x40] sm:$0xf] }
  0x31   :  { %604 = vmatpush.bf16.msra.mxu3 %v2844_v38  ;;  %v3823_v60 = vld [vmem:[#allocation2 + $0x4c] sm:$0xf0]  ;;  %v2791_v61 = vld [vmem:[#allocation2 + $0x140] sm:$0xf]  ;;  %v2812_v62 = vor.u32 %v3857_v54, %v2809_v55  ;;  %v3821_v0 = vld [vmem:[#allocation2 + $0x44] sm:$0xf] }
  0x32   :  { %566 = vmatpush.bf16.msra.mxu0 %v2696_v44  ;;  %v3855_v63 = vld [vmem:[#allocation2 + $0x14c] sm:$0xf0]  ;;  %v2665_v1 = vld [vmem:[#allocation2 + $0x50] sm:$0xf0]  ;;  %v3853_v2 = vld [vmem:[#allocation2 + $0x144] sm:$0xf]  ;;  %v2664_v4 = vor.u32 %v3823_v60, %v2663_v59 }
  0x33   :  { %579 = vmatpush.bf16.msra.mxu1 %v2824_v45  ;;  %v2793_v3 = vld [vmem:[#allocation2 + $0x150] sm:$0xf0]  ;;  %v2792_v5 = vor.u32 %v3855_v63, %v2791_v61  ;;  %v2668_v6 = vor.u32 %v3821_v0, %v2665_v1  ;;  %v2647_v7 = vld [vmem:[#allocation2 + $0x20] sm:$0xf]  ;;  %v3819_v8 = vld [vmem:[#allocation2 + $0x2c] sm:$0xf0] }
  0x34   :  { %592 = vmatpush.bf16.msra.mxu2 %v2700_v46  ;;  %v2775_v9 = vld [vmem:[#allocation2 + $0x120] sm:$0xf]  ;;  %v2796_v10 = vor.u32 %v3853_v2, %v2793_v3  ;;  %v3851_v11 = vld [vmem:[#allocation2 + $0x12c] sm:$0xf0]  ;;  %v3817_v12 = vld [vmem:[#allocation2 + $0x24] sm:$0xf]  ;;  %v2648_v17 = vor.u32 %v3819_v8, %v2647_v7 }
  0x35   :  { %605 = vmatpush.bf16.msra.mxu3 %v2828_v50  ;;  %v2649_v13 = vld [vmem:[#allocation2 + $0x30] sm:$0xf0]  ;;  %v3849_v14 = vld [vmem:[#allocation2 + $0x124] sm:$0xf]  ;;  %v2631_v16 = vld [vmem:[#allocation2] sm:$0xf]  ;;  %v2776_v21 = vor.u32 %v3851_v11, %v2775_v9 }
  0x36   :  { %567 = vmatpush.bf16.msra.mxu0 %v2680_v56  ;;  %v2777_v15 = vld [vmem:[#allocation2 + $0x130] sm:$0xf0]  ;;  %v3815_v18 = vld [vmem:[#allocation2 + $0xc] sm:$0xf0]  ;;  %v2759_v19 = vld [vmem:[#allocation2 + $0x100] sm:$0xf]  ;;  %v2652_v22 = vor.u32 %v3817_v12, %v2649_v13 }
  0x37   :  { %580 = vmatpush.bf16.msra.mxu1 %v2808_v57  ;;  %v3847_v20 = vld [vmem:[#allocation2 + $0x10c] sm:$0xf0]  ;;  %v3813_v23 = vld [vmem:[#allocation2 + $0x4] sm:$0xf]  ;;  %v2633_v24 = vld [vmem:[#allocation2 + $0x10] sm:$0xf0]  ;;  %v2780_v26 = vor.u32 %v3849_v14, %v2777_v15  ;;  %v2632_v32 = vor.u32 %v3815_v18, %v2631_v16 }
  0x38   :  { %593 = vmatpush.bf16.msra.mxu2 %v2684_v58  ;;  %v160_v25 = vld [vmem:[%s4525_s0] sm:$0xf]  ;;  %v3845_v27 = vld [vmem:[#allocation2 + $0x104] sm:$0xf]  ;;  %v2761_v28 = vld [vmem:[#allocation2 + $0x110] sm:$0xf0]  ;;  %v2760_v36 = vor.u32 %v3847_v20, %v2759_v19  ;;  %v2636_v37 = vor.u32 %v3813_v23, %v2633_v24 }
  0x39   :  { %606 = vmatpush.bf16.msra.mxu3 %v2812_v62  ;;  %162 = vst [vmem:[#allocation1] ss:$4 sm:$0xff] %v160_v25  ;;  %v2751_v29 = vld [vmem:[#allocation2 + $0xe8] sm:$0xf]  ;;  %v3844_v30 = vld [vmem:[#allocation2 + $0xf4] sm:$0xf0]  ;;  %v2764_v40 = vor.u32 %v3845_v27, %v2761_v28 }
  0x3a   :  { %568 = vmatpush.bf16.msra.mxu0 %v2664_v4  ;;  %v2879_v31 = vld [vmem:[#allocation2 + $0x1e8] sm:$0xf]  ;;  %v3876_v33 = vld [vmem:[#allocation2 + $0x1f4] sm:$0xf0]  ;;  %v3842_v34 = vld [vmem:[#allocation2 + $0xec] sm:$0xf]  ;;  %v2752_v41 = vor.u32 %v3844_v30, %v2751_v29 }
  0x3b   :  { %581 = vmatpush.bf16.msra.mxu1 %v2792_v5  ;;  %v2753_v35 = vld [vmem:[#allocation2 + $0xf8] sm:$0xf0]  ;;  %v3874_v38 = vld [vmem:[#allocation2 + $0x1ec] sm:$0xf]  ;;  %v2735_v42 = vld [vmem:[#allocation2 + $0xc8] sm:$0xf]  ;;  %v2880_v45 = vor.u32 %v3876_v33, %v2879_v31 }
  0x3c   :  { %594 = vmatpush.bf16.msra.mxu2 %v2668_v6  ;;  %v2881_v39 = vld [vmem:[#allocation2 + $0x1f8] sm:$0xf0]  ;;  %v3840_v43 = vld [vmem:[#allocation2 + $0xd4] sm:$0xf0]  ;;  %v2863_v44 = vld [vmem:[#allocation2 + $0x1c8] sm:$0xf]  ;;  %v2756_v46 = vor.u32 %v3842_v34, %v2753_v35 }
  0x3d   :  { %607 = vmatpush.bf16.msra.mxu3 %v2796_v10  ;;  %v3872_v47 = vld [vmem:[#allocation2 + $0x1d4] sm:$0xf0]  ;;  %v3838_v48 = vld [vmem:[#allocation2 + $0xcc] sm:$0xf]  ;;  %v2884_v50 = vor.u32 %v3874_v38, %v2881_v39  ;;  %v2737_v51 = vld [vmem:[#allocation2 + $0xd8] sm:$0xf0]  ;;  %v2736_v57 = vor.u32 %v3840_v43, %v2735_v42 }
  0x3e   :  { %569 = vmatpush.bf16.msra.mxu0 %v2648_v17  ;;  %v679_v49 = vld [vmem:[%s4526_s1] sm:$0xf]  ;;  %v3870_v52 = vld [vmem:[#allocation2 + $0x1cc] sm:$0xf]  ;;  %v2865_v53 = vld [vmem:[#allocation2 + $0x1d8] sm:$0xf0]  ;;  %v2864_v59 = vor.u32 %v3872_v47, %v2863_v44  ;;  %v2740_v60 = vor.u32 %v3838_v48, %v2737_v51 }
  0x3f   :  { %582 = vmatpush.bf16.msra.mxu1 %v2776_v21  ;;  %v2719_v61 = vld [vmem:[#allocation2 + $0xa8] sm:$0xf]  ;;  %v3836_v62 = vld [vmem:[#allocation2 + $0xb4] sm:$0xf0]  ;;  %v2868_v0 = vor.u32 %v3870_v52, %v2865_v53  ;;  %v3834_v2 = vld [vmem:[#allocation2 + $0xac] sm:$0xf] }
  0x40   :  { %595 = vmatpush.bf16.msra.mxu2 %v2652_v22  ;;  %v163_v54 = vld.sshfl [vmem:[#allocation1] sm:$0xff pattern:$0x73625140]  ;;  %v164_v55 = vld.sshfl [vmem:[#allocation1 + $0x8] sm:$0xff pattern:$0x73625140]  ;;  %v2720_v6 = vor.u32 %v3836_v62, %v2719_v61 }
  0x41   :  { %608 = vmatpush.bf16.msra.mxu3 %v2780_v26  ;;  %v4448_v56 = vpack.c.bf16 %v163_v54, %v163_v54  ;;  %v4450_v58 = vpack.c.bf16 %v164_v55, %v164_v55  ;;  %681 = vst [vmem:[#allocation1] ss:$4 sm:$0xff] %v679_v49  ;;  %v2847_v63 = vld [vmem:[#allocation2 + $0x1a8] sm:$0xf]  ;;  %v3868_v1 = vld [vmem:[#allocation2 + $0x1b4] sm:$0xf0] }
  0x42   :  { %570 = vmatpush.bf16.msra.mxu0 %v2632_v32  ;;  %v2721_v3 = vld [vmem:[#allocation2 + $0xb8] sm:$0xf0]  ;;  %v3866_v4 = vld [vmem:[#allocation2 + $0x1ac] sm:$0xf]  ;;  %v2848_v7 = vor.u32 %v3868_v1, %v2847_v63  ;;  %v2703_v9 = vld [vmem:[#allocation2 + $0x88] sm:$0xf] }
  0x43   :  { %583 = vmatpush.bf16.msra.mxu1 %v2760_v36  ;;  %v2849_v5 = vld [vmem:[#allocation2 + $0x1b8] sm:$0xf0]  ;;  %v2724_v8 = vor.u32 %v3834_v2, %v2721_v3  ;;  %v3832_v10 = vld [vmem:[#allocation2 + $0x94] sm:$0xf0]  ;;  %v2831_v11 = vld [vmem:[#allocation2 + $0x188] sm:$0xf] }
  0x44   :  { %596 = vmatpush.bf16.msra.mxu2 %v2636_v37  ;;  %v2852_v12 = vor.u32 %v3866_v4, %v2849_v5  ;;  %v3864_v13 = vld [vmem:[#allocation2 + $0x194] sm:$0xf0]  ;;  %v3830_v14 = vld [vmem:[#allocation2 + $0x8c] sm:$0xf]  ;;  %v2705_v15 = vld [vmem:[#allocation2 + $0x98] sm:$0xf0]  ;;  %v2704_v18 = vor.u32 %v3832_v10, %v2703_v9 }
  0x45   :  { %609 = vmatpush.bf16.msra.mxu3 %v2764_v40  ;;  %571 = vmatmul.bf16.vlgmr.msra.gmra.mxu0 %v4448_v56  ;;  %v3862_v16 = vld [vmem:[#allocation2 + $0x18c] sm:$0xf]  ;;  %v2833_v17 = vld [vmem:[#allocation2 + $0x198] sm:$0xf0]  ;;  %v2832_v19 = vor.u32 %v3864_v13, %v2831_v11  ;;  %v2708_v20 = vor.u32 %v3830_v14, %v2705_v15  ;;  %v2687_v21 = vld [vmem:[#allocation2 + $0x68] sm:$0xf] }
  0x46   :  { %615 = vmatpush.bf16.msrb.mxu0 %v2752_v41  ;;  %584 = vmatmul.bf16.vlgmr.msra.gmra.mxu1 %v4450_v58  ;;  %v3828_v22 = vld [vmem:[#allocation2 + $0x74] sm:$0xf0]  ;;  %v2815_v23 = vld [vmem:[#allocation2 + $0x168] sm:$0xf]  ;;  %v2836_v24 = vor.u32 %v3862_v16, %v2833_v17  ;;  %v3826_v26 = vld [vmem:[#allocation2 + $0x6c] sm:$0xf] }
  0x47   :  { %628 = vmatpush.bf16.msrb.mxu1 %v2880_v45  ;;  %597 = vmatmul.bf16.vlgmr.msra.gmra.mxu2 %v4448_v56  ;;  %v3860_v25 = vld [vmem:[#allocation2 + $0x174] sm:$0xf0]  ;;  %v2689_v27 = vld [vmem:[#allocation2 + $0x78] sm:$0xf0]  ;;  %v3858_v28 = vld [vmem:[#allocation2 + $0x16c] sm:$0xf]  ;;  %v2688_v30 = vor.u32 %v3828_v22, %v2687_v21 }
  0x48   :  { %641 = vmatpush.bf16.msrb.mxu2 %v2756_v46  ;;  %610 = vmatmul.bf16.vlgmr.msra.gmra.mxu3 %v4450_v58  ;;  %v2817_v29 = vld [vmem:[#allocation2 + $0x178] sm:$0xf0]  ;;  %v2816_v31 = vor.u32 %v3860_v25, %v2815_v23  ;;  %v2692_v32 = vor.u32 %v3826_v26, %v2689_v27  ;;  %v2671_v33 = vld [vmem:[#allocation2 + $0x48] sm:$0xf]  ;;  %v3824_v34 = vld [vmem:[#allocation2 + $0x54] sm:$0xf0] }
  0x49   :  { %654 = vmatpush.bf16.msrb.mxu3 %v2884_v50  ;;  %v2799_v35 = vld [vmem:[#allocation2 + $0x148] sm:$0xf]  ;;  %v2820_v36 = vor.u32 %v3858_v28, %v2817_v29  ;;  %v3856_v37 = vld [vmem:[#allocation2 + $0x154] sm:$0xf0]  ;;  %v3822_v38 = vld [vmem:[#allocation2 + $0x4c] sm:$0xf]  ;;  %v2672_v42 = vor.u32 %v3824_v34, %v2671_v33 }
  0x4a   :  { %616 = vmatpush.bf16.msrb.mxu0 %v2736_v57  ;;  %v2673_v39 = vld [vmem:[#allocation2 + $0x58] sm:$0xf0]  ;;  %v3854_v40 = vld [vmem:[#allocation2 + $0x14c] sm:$0xf]  ;;  %v2800_v43 = vor.u32 %v3856_v37, %v2799_v35  ;;  %v2655_v45 = vld [vmem:[#allocation2 + $0x28] sm:$0xf] }
  0x4b   :  { %629 = vmatpush.bf16.msrb.mxu1 %v2864_v59  ;;  %v2801_v41 = vld [vmem:[#allocation2 + $0x158] sm:$0xf0]  ;;  %v2676_v44 = vor.u32 %v3822_v38, %v2673_v39  ;;  %v3820_v46 = vld [vmem:[#allocation2 + $0x34] sm:$0xf0]  ;;  %v2783_v47 = vld [vmem:[#allocation2 + $0x128] sm:$0xf] }
  0x4c   :  { %642 = vmatpush.bf16.msrb.mxu2 %v2740_v60  ;;  %v2804_v48 = vor.u32 %v3854_v40, %v2801_v41  ;;  %v3852_v49 = vld [vmem:[#allocation2 + $0x134] sm:$0xf0]  ;;  %v3818_v50 = vld [vmem:[#allocation2 + $0x2c] sm:$0xf]  ;;  %v2657_v51 = vld [vmem:[#allocation2 + $0x38] sm:$0xf0]  ;;  %v2656_v54 = vor.u32 %v3820_v46, %v2655_v45 }
  0x4d   :  { %655 = vmatpush.bf16.msrb.mxu3 %v2868_v0  ;;  %v3850_v52 = vld [vmem:[#allocation2 + $0x12c] sm:$0xf]  ;;  %v2785_v53 = vld [vmem:[#allocation2 + $0x138] sm:$0xf0]  ;;  %v2639_v55 = vld [vmem:[#allocation2 + $0x8] sm:$0xf]  ;;  %v2784_v59 = vor.u32 %v3852_v49, %v2783_v47  ;;  %v2660_v60 = vor.u32 %v3818_v50, %v2657_v51 }
  0x4e   :  { %617 = vmatpush.bf16.msrb.mxu0 %v2720_v6  ;;  %v3816_v57 = vld [vmem:[#allocation2 + $0x14] sm:$0xf0]  ;;  %v2767_v61 = vld [vmem:[#allocation2 + $0x108] sm:$0xf]  ;;  %v3814_v63 = vld [vmem:[#allocation2 + $0xc] sm:$0xf]  ;;  %v2788_v0 = vor.u32 %v3850_v52, %v2785_v53 }
  0x4f   :  { %630 = vmatpush.bf16.msrb.mxu1 %v2848_v7  ;;  %v3848_v62 = vld [vmem:[#allocation2 + $0x114] sm:$0xf0]  ;;  %v2641_v1 = vld [vmem:[#allocation2 + $0x18] sm:$0xf0]  ;;  %v3846_v2 = vld [vmem:[#allocation2 + $0x10c] sm:$0xf]  ;;  %v2640_v7 = vor.u32 %v3816_v57, %v2639_v55 }
  0x50   :  { %643 = vmatpush.bf16.msrb.mxu2 %v2724_v8  ;;  %v2769_v3 = vld [vmem:[#allocation2 + $0x118] sm:$0xf0]  ;;  %v2999_v4 = vld [vmem:[#allocation5 + $0xe0] sm:$0xf]  ;;  %v3907_v5 = vld [vmem:[#allocation5 + $0xec] sm:$0xf0]  ;;  %v2768_v11 = vor.u32 %v3848_v62, %v2767_v61 }
  0x51   :  { %656 = vmatpush.bf16.msrb.mxu3 %v2852_v12  ;;  %v3127_v6 = vld [vmem:[#allocation5 + $0x1e0] sm:$0xf]  ;;  %v3939_v8 = vld [vmem:[#allocation5 + $0x1ec] sm:$0xf0]  ;;  %v3905_v9 = vld [vmem:[#allocation5 + $0xe4] sm:$0xf]  ;;  %v2644_v12 = vor.u32 %v3814_v63, %v2641_v1  ;;  %v2772_v15 = vor.u32 %v3846_v2, %v2769_v3  ;;  %v3000_v16 = vor.u32 %v3907_v5, %v2999_v4 }
  0x52   :  { %618 = vmatpush.bf16.msrb.mxu0 %v2704_v18  ;;  %v3001_v10 = vld [vmem:[#allocation5 + $0xf0] sm:$0xf0]  ;;  %v3937_v13 = vld [vmem:[#allocation5 + $0x1e4] sm:$0xf]  ;;  %v3128_v17 = vor.u32 %v3939_v8, %v3127_v6  ;;  %v3111_v21 = vld [vmem:[#allocation5 + $0x1c0] sm:$0xf] }
  0x53   :  { %631 = vmatpush.bf16.msrb.mxu1 %v2832_v19  ;;  %v3129_v14 = vld [vmem:[#allocation5 + $0x1f0] sm:$0xf0]  ;;  %v3004_v18 = vor.u32 %v3905_v9, %v3001_v10  ;;  %v2983_v19 = vld [vmem:[#allocation5 + $0xc0] sm:$0xf]  ;;  %v3935_v23 = vld [vmem:[#allocation5 + $0x1cc] sm:$0xf0] }
  0x54   :  { %644 = vmatpush.bf16.msrb.mxu2 %v2708_v20  ;;  %v3903_v20 = vld [vmem:[#allocation5 + $0xcc] sm:$0xf0]  ;;  %v3132_v22 = vor.u32 %v3937_v13, %v3129_v14  ;;  %v2985_v25 = vld [vmem:[#allocation5 + $0xd0] sm:$0xf0]  ;;  %v3933_v26 = vld [vmem:[#allocation5 + $0x1c4] sm:$0xf]  ;;  %v3112_v29 = vor.u32 %v3935_v23, %v3111_v21 }
  0x55   :  { %657 = vmatpush.bf16.msrb.mxu3 %v2836_v24  ;;  %v3901_v24 = vld [vmem:[#allocation5 + $0xc4] sm:$0xf]  ;;  %v3113_v27 = vld [vmem:[#allocation5 + $0x1d0] sm:$0xf0]  ;;  %v2984_v28 = vor.u32 %v3903_v20, %v2983_v19  ;;  %v3095_v33 = vld [vmem:[#allocation5 + $0x1a0] sm:$0xf] }
  0x56   :  { %619 = vmatpush.bf16.msrb.mxu0 %v2688_v30  ;;  %v2988_v30 = vor.u32 %v3901_v24, %v2985_v25  ;;  %v3116_v34 = vor.u32 %v3933_v26, %v3113_v27  ;;  %v3931_v35 = vld [vmem:[#allocation5 + $0x1ac] sm:$0xf0]  ;;  %v2969_v37 = vld [vmem:[#allocation5 + $0xb0] sm:$0xf0]  ;;  %v3929_v38 = vld [vmem:[#allocation5 + $0x1a4] sm:$0xf] }
  0x57   :  { %632 = vmatpush.bf16.msrb.mxu1 %v2816_v31  ;;  %v2967_v31 = vld [vmem:[#allocation5 + $0xa0] sm:$0xf]  ;;  %v3097_v39 = vld [vmem:[#allocation5 + $0x1b0] sm:$0xf0]  ;;  %v3096_v41 = vor.u32 %v3931_v35, %v3095_v33  ;;  %v3927_v47 = vld [vmem:[#allocation5 + $0x18c] sm:$0xf0] }
  0x58   :  { %645 = vmatpush.bf16.msrb.mxu2 %v2692_v32  ;;  %v3899_v32 = vld [vmem:[#allocation5 + $0xac] sm:$0xf0]  ;;  %v3079_v45 = vld [vmem:[#allocation5 + $0x180] sm:$0xf]  ;;  %v3100_v46 = vor.u32 %v3929_v38, %v3097_v39  ;;  %v3925_v49 = vld [vmem:[#allocation5 + $0x184] sm:$0xf] }
  0x59   :  { %658 = vmatpush.bf16.msrb.mxu3 %v2820_v36  ;;  %v3897_v36 = vld [vmem:[#allocation5 + $0xa4] sm:$0xf]  ;;  %v2968_v40 = vor.u32 %v3899_v32, %v2967_v31  ;;  %v3081_v50 = vld [vmem:[#allocation5 + $0x190] sm:$0xf0]  ;;  %v2935_v53 = vld [vmem:[#allocation5 + $0x60] sm:$0xf] }
  0x5a   :  { %620 = vmatpush.bf16.msrb.mxu0 %v2672_v42  ;;  %v2972_v42 = vor.u32 %v3897_v36, %v2969_v37  ;;  %v3063_v55 = vld [vmem:[#allocation5 + $0x160] sm:$0xf]  ;;  %v3084_v57 = vor.u32 %v3925_v49, %v3081_v50  ;;  %v2937_v61 = vld [vmem:[#allocation5 + $0x70] sm:$0xf0]  ;;  %v3921_v62 = vld [vmem:[#allocation5 + $0x164] sm:$0xf] }
  0x5b   :  { %633 = vmatpush.bf16.msrb.mxu1 %v2800_v43  ;;  %v2951_v43 = vld [vmem:[#allocation5 + $0x80] sm:$0xf]  ;;  %v3065_v63 = vld [vmem:[#allocation5 + $0x170] sm:$0xf0]  ;;  %v3887_v4 = vld [vmem:[#allocation5 + $0x4c] sm:$0xf0] }
  0x5c   :  { %646 = vmatpush.bf16.msrb.mxu2 %v2676_v44  ;;  %v3895_v44 = vld [vmem:[#allocation5 + $0x8c] sm:$0xf0]  ;;  %v2919_v3 = vld [vmem:[#allocation5 + $0x40] sm:$0xf]  ;;  %v3068_v6 = vor.u32 %v3921_v62, %v3065_v63  ;;  %v3885_v8 = vld [vmem:[#allocation5 + $0x44] sm:$0xf] }
  0x5d   :  { %659 = vmatpush.bf16.msrb.mxu3 %v2804_v48  ;;  %v3893_v48 = vld [vmem:[#allocation5 + $0x84] sm:$0xf]  ;;  %v2952_v51 = vor.u32 %v3895_v44, %v2951_v43  ;;  %v3047_v5 = vld [vmem:[#allocation5 + $0x140] sm:$0xf]  ;;  %v2921_v9 = vld [vmem:[#allocation5 + $0x50] sm:$0xf0] }
  0x5e   :  { %621 = vmatpush.bf16.msrb.mxu0 %v2656_v54  ;;  %v3891_v54 = vld [vmem:[#allocation5 + $0x6c] sm:$0xf0]  ;;  %v3917_v10 = vld [vmem:[#allocation5 + $0x144] sm:$0xf]  ;;  %v2903_v13 = vld [vmem:[#allocation5 + $0x20] sm:$0xf] }
  0x5f   :  { %634 = vmatpush.bf16.msrb.mxu1 %v2784_v59  ;;  %v3923_v59 = vld [vmem:[#allocation5 + $0x16c] sm:$0xf0]  ;;  %v3881_v20 = vld [vmem:[#allocation5 + $0x24] sm:$0xf]  ;;  %v2905_v21 = vld [vmem:[#allocation5 + $0x30] sm:$0xf0] }
  0x60   :  { %647 = vmatpush.bf16.msrb.mxu2 %v2660_v60  ;;  %v3889_v60 = vld [vmem:[#allocation5 + $0x64] sm:$0xf]  ;;  %v3064_v1 = vor.u32 %v3923_v59, %v3063_v55  ;;  %v3033_v23 = vld [vmem:[#allocation5 + $0x130] sm:$0xf0]  ;;  %v2887_v24 = vld [vmem:[#allocation5] sm:$0xf]  ;;  %v2908_v31 = vor.u32 %v3881_v20, %v2905_v21 }
  0x61   :  { %660 = vmatpush.bf16.msrb.mxu3 %v2788_v0  ;;  %v2936_v0 = vor.u32 %v3891_v54, %v2935_v53  ;;  %v2940_v2 = vor.u32 %v3889_v60, %v2937_v61  ;;  %v3879_v25 = vld [vmem:[#allocation5 + $0xc] sm:$0xf0]  ;;  %v3015_v27 = vld [vmem:[#allocation5 + $0x100] sm:$0xf]  ;;  %v2889_v32 = vld [vmem:[#allocation5 + $0x10] sm:$0xf0] }
  0x62   :  { %622 = vmatpush.bf16.msrb.mxu0 %v2640_v7  ;;  %v3919_v7 = vld [vmem:[#allocation5 + $0x14c] sm:$0xf0]  ;;  %v3909_v33 = vld [vmem:[#allocation5 + $0x104] sm:$0xf]  ;;  %v3007_v36 = vld [vmem:[#allocation5 + $0xe8] sm:$0xf] }
  0x63   :  { %635 = vmatpush.bf16.msrb.mxu1 %v2768_v11  ;;  %v3049_v11 = vld [vmem:[#allocation5 + $0x150] sm:$0xf0]  ;;  %v3048_v14 = vor.u32 %v3919_v7, %v3047_v5  ;;  %v3908_v37 = vld [vmem:[#allocation5 + $0xf4] sm:$0xf0]  ;;  %v3135_v38 = vld [vmem:[#allocation5 + $0x1e8] sm:$0xf] }
  0x64   :  { %648 = vmatpush.bf16.msrb.mxu2 %v2644_v12  ;;  %v2920_v12 = vor.u32 %v3887_v4, %v2919_v3  ;;  %v3052_v19 = vor.u32 %v3917_v10, %v3049_v11  ;;  %v3940_v39 = vld [vmem:[#allocation5 + $0x1f4] sm:$0xf0]  ;;  %v3938_v43 = vld [vmem:[#allocation5 + $0x1ec] sm:$0xf]  ;;  %v3119_v53 = vld [vmem:[#allocation5 + $0x1c8] sm:$0xf] }
  0x65   :  { %661 = vmatpush.bf16.msrb.mxu3 %v2772_v15  ;;  %623 = vmatmul.bf16.vlgmr.msrb.gmra.mxu0 %v4448_v56  ;;  %v2924_v15 = vor.u32 %v3885_v8, %v2921_v9  ;;  %v683_v49 = vld.sshfl [vmem:[#allocation1 + $0x8] sm:$0xff pattern:$0x73625140]  ;;  %v3136_v50 = vor.u32 %v3940_v39, %v3135_v38  ;;  %v3902_v59 = vld [vmem:[#allocation5 + $0xcc] sm:$0xf]  ;;  %s4543_s27 = sld [smem:[#allocation20_spill]] }
  0x66   :  { %1082 = vmatpush.bf16.msra.mxu0 %v3000_v16  ;;  %636 = vmatmul.bf16.vlgmr.msrb.gmra.mxu1 %v4450_v58  ;;  %v3883_v16 = vld [vmem:[#allocation5 + $0x2c] sm:$0xf0]  ;;  %v2993_v60 = vld [vmem:[#allocation5 + $0xd8] sm:$0xf0]  ;;  %v4462_v61 = vpack.c.bf16 %v683_v49, %v683_v49  ;;  %v3934_v62 = vld [vmem:[#allocation5 + $0x1cc] sm:$0xf] }
  0x67   :  { %1095 = vmatpush.bf16.msra.mxu1 %v3128_v17  ;;  %649 = vmatmul.bf16.vlgmr.msrb.gmra.mxu2 %v4448_v56  ;;  %v2953_v56 = vld [vmem:[#allocation5 + $0x90] sm:$0xf0]  ;;  %v3031_v17 = vld [vmem:[#allocation5 + $0x120] sm:$0xf]  ;;  %v2904_v26 = vor.u32 %v3883_v16, %v2903_v13  ;;  %v3121_v63 = vld [vmem:[#allocation5 + $0x1d8] sm:$0xf0] }
  0x68   :  { %1108 = vmatpush.bf16.msra.mxu2 %v3004_v18  ;;  %662 = vmatmul.bf16.vlgmr.msrb.gmra.mxu3 %v4450_v58  ;;  %v3080_v58 = vor.u32 %v3927_v47, %v3079_v45  ;;  %v2956_v52 = vor.u32 %v3893_v48, %v2953_v56  ;;  %v3915_v18 = vld [vmem:[#allocation5 + $0x12c] sm:$0xf0]  ;;  %v682_v47 = vld.sshfl [vmem:[#allocation1] sm:$0xff pattern:$0x73625140]  ;;  %v3008_v56 = vor.u32 %v3908_v37, %v3007_v36  ;;  %s4340_s29 = smov [#allocation14]  }
  0x69   :  { %1121 = vmatpush.bf16.msra.mxu3 %v3132_v22  ;;  %v3913_v22 = vld [vmem:[#allocation5 + $0x124] sm:$0xf]  ;;  %v4460_v55 = vpack.c.bf16 %v682_v47, %v682_v47  ;;  %v2975_v3 = vld [vmem:[#allocation5 + $0xa8] sm:$0xf]  ;;  %v3900_v4 = vld [vmem:[#allocation5 + $0xb4] sm:$0xf0] }
  0x6a   :  { %1083 = vmatpush.bf16.msra.mxu0 %v2984_v28  ;;  %v3911_v28 = vld [vmem:[#allocation5 + $0x10c] sm:$0xf0]  ;;  %v3036_v35 = vor.u32 %v3913_v22, %v3033_v23  ;;  %v3103_v5 = vld [vmem:[#allocation5 + $0x1a8] sm:$0xf]  ;;  %v3932_v7 = vld [vmem:[#allocation5 + $0x1b4] sm:$0xf0] }
  0x6b   :  { %1096 = vmatpush.bf16.msra.mxu1 %v3112_v29  ;;  %v3877_v29 = vld [vmem:[#allocation5 + $0x4] sm:$0xf]  ;;  %v3016_v44 = vor.u32 %v3911_v28, %v3015_v27  ;;  %v3898_v8 = vld [vmem:[#allocation5 + $0xac] sm:$0xf]  ;;  %v2977_v9 = vld [vmem:[#allocation5 + $0xb8] sm:$0xf0]  ;;  %v3104_v13 = vor.u32 %v3932_v7, %v3103_v5 }
  0x6c   :  { %1109 = vmatpush.bf16.msra.mxu2 %v2988_v30  ;;  %v3032_v30 = vor.u32 %v3915_v18, %v3031_v17  ;;  %v2892_v45 = vor.u32 %v3877_v29, %v2889_v32  ;;  %v3930_v10 = vld [vmem:[#allocation5 + $0x1ac] sm:$0xf]  ;;  %v3105_v11 = vld [vmem:[#allocation5 + $0x1b8] sm:$0xf0]  ;;  %v3896_v16 = vld [vmem:[#allocation5 + $0x94] sm:$0xf0] }
  0x6d   :  { %1122 = vmatpush.bf16.msra.mxu3 %v3116_v34  ;;  %v3017_v34 = vld [vmem:[#allocation5 + $0x110] sm:$0xf0]  ;;  %v3087_v17 = vld [vmem:[#allocation5 + $0x188] sm:$0xf]  ;;  %v3108_v18 = vor.u32 %v3930_v10, %v3105_v11  ;;  %v3894_v20 = vld [vmem:[#allocation5 + $0x8c] sm:$0xf] }
  0x6e   :  { %1084 = vmatpush.bf16.msra.mxu0 %v2968_v40  ;;  %v2888_v40 = vor.u32 %v3879_v25, %v2887_v24  ;;  %v3020_v48 = vor.u32 %v3909_v33, %v3017_v34  ;;  %v2961_v21 = vld [vmem:[#allocation5 + $0x98] sm:$0xf0]  ;;  %v3926_v22 = vld [vmem:[#allocation5 + $0x18c] sm:$0xf]  ;;  %v2943_v27 = vld [vmem:[#allocation5 + $0x68] sm:$0xf] }
  0x6f   :  { %1097 = vmatpush.bf16.msra.mxu1 %v3096_v41  ;;  %v3906_v41 = vld [vmem:[#allocation5 + $0xec] sm:$0xf]  ;;  %v3089_v23 = vld [vmem:[#allocation5 + $0x198] sm:$0xf0]  ;;  %v3892_v28 = vld [vmem:[#allocation5 + $0x74] sm:$0xf0] }
  0x70   :  { %1110 = vmatpush.bf16.msra.mxu2 %v2972_v42  ;;  %v3009_v42 = vld [vmem:[#allocation5 + $0xf8] sm:$0xf0]  ;;  %v3071_v29 = vld [vmem:[#allocation5 + $0x168] sm:$0xf]  ;;  %v3890_v32 = vld [vmem:[#allocation5 + $0x6c] sm:$0xf]  ;;  %v2944_v36 = vor.u32 %v3892_v28, %v2943_v27 }
  0x71   :  { %1123 = vmatpush.bf16.msra.mxu3 %v3100_v46  ;;  %v3137_v46 = vld [vmem:[#allocation5 + $0x1f8] sm:$0xf0]  ;;  %v3922_v34 = vld [vmem:[#allocation5 + $0x16c] sm:$0xf]  ;;  %v2927_v39 = vld [vmem:[#allocation5 + $0x48] sm:$0xf] }
  0x72   :  { %1085 = vmatpush.bf16.msra.mxu0 %v2952_v51  ;;  %v3012_v51 = vor.u32 %v3906_v41, %v3009_v42  ;;  %v3140_v54 = vor.u32 %v3938_v43, %v3137_v46  ;;  %v2945_v33 = vld [vmem:[#allocation5 + $0x78] sm:$0xf0]  ;;  %v3055_v41 = vld [vmem:[#allocation5 + $0x148] sm:$0xf]  ;;  %v3920_v43 = vld [vmem:[#allocation5 + $0x154] sm:$0xf0] }
  0x73   :  { %1098 = vmatpush.bf16.msra.mxu1 %v3080_v58  ;;  %v2991_v58 = vld [vmem:[#allocation5 + $0xc8] sm:$0xf]  ;;  %v2948_v38 = vor.u32 %v3890_v32, %v2945_v33  ;;  %v3918_v46 = vld [vmem:[#allocation5 + $0x14c] sm:$0xf]  ;;  %v3057_v47 = vld [vmem:[#allocation5 + $0x158] sm:$0xf0] }
  0x74   :  { %1111 = vmatpush.bf16.msra.mxu2 %v2956_v52  ;;  %v3904_v52 = vld [vmem:[#allocation5 + $0xd4] sm:$0xf0]  ;;  %v2897_v7 = vld [vmem:[#allocation5 + $0x18] sm:$0xf0]  ;;  %v3199_v10 = vld [vmem:[#allocation7 + $0x70] sm:$0xf] }
  0x75   :  { %1124 = vmatpush.bf16.msra.mxu3 %v3084_v57  ;;  %v3936_v57 = vld [vmem:[#allocation5 + $0x1d4] sm:$0xf0]  ;;  %v3319_v28 = vld [vmem:[#allocation7 + $0x160] sm:$0xf]  ;;  %v3391_v33 = vld [vmem:[#allocation7 + $0x1f0] sm:$0xf] }
  0x76   :  { %1086 = vmatpush.bf16.msra.mxu0 %v2936_v0  ;;  %v2992_v0 = vor.u32 %v3904_v52, %v2991_v58  ;;  %v3039_v58 = vld [vmem:[#allocation5 + $0x128] sm:$0xf]  ;;  %v3060_v52 = vor.u32 %v3918_v46, %v3057_v47  ;;  %v3956_v11 = vld [vmem:[#allocation7 + $0x74] sm:$0xf0]  ;;  %v3383_v47 = vld [vmem:[#allocation7 + $0x1e0] sm:$0xf] }
  0x77   :  { %1099 = vmatpush.bf16.msra.mxu1 %v3064_v1  ;;  %v3120_v1 = vor.u32 %v3936_v57, %v3119_v53  ;;  %v3916_v53 = vld [vmem:[#allocation5 + $0x134] sm:$0xf0]  ;;  %v2913_v57 = vld [vmem:[#allocation5 + $0x38] sm:$0xf0]  ;;  %v3966_v46 = vld [vmem:[#allocation7 + $0xc4] sm:$0xf0] }
  0x78   :  { %1112 = vmatpush.bf16.msra.mxu2 %v2940_v2  ;;  %v2996_v2 = vor.u32 %v3902_v59, %v2993_v60  ;;  %v3914_v59 = vld [vmem:[#allocation5 + $0x12c] sm:$0xf]  ;;  %v3041_v60 = vld [vmem:[#allocation5 + $0x138] sm:$0xf0]  ;;  %s2614_s11 = sshll.u32 %s4340_s29, 4  ;;  %s4544_s19 = sld [smem:[#allocation21_spill]]  ;;  %s2615_s11 = int_to_ptr.vmem [resolvable:$true] %s2614_s11 }
  0x79   :  { %1125 = vmatpush.bf16.msra.mxu3 %v3068_v6  ;;  %v3124_v6 = vor.u32 %v3934_v62, %v3121_v63  ;;  %v2895_v63 = vld [vmem:[#allocation5 + $0x8] sm:$0xf]  ;;  %v3044_v5 = vor.u32 %v3914_v59, %v3041_v60  ;;  %v3303_v60 = vld [vmem:[#allocation7 + $0x140] sm:$0xf] }
  0x7a   :  { %1087 = vmatpush.bf16.msra.mxu0 %v2920_v12  ;;  %v2976_v12 = vor.u32 %v3900_v4, %v2975_v3  ;;  %v3023_v3 = vld [vmem:[#allocation5 + $0x108] sm:$0xf]  ;;  %v3912_v4 = vld [vmem:[#allocation5 + $0x114] sm:$0xf0] }
  0x7b   :  { %1100 = vmatpush.bf16.msra.mxu1 %v3048_v14  ;;  %v2980_v14 = vor.u32 %v3898_v8, %v2977_v9  ;;  %v3910_v8 = vld [vmem:[#allocation5 + $0x10c] sm:$0xf]  ;;  %v3025_v9 = vld [vmem:[#allocation5 + $0x118] sm:$0xf0] }
  0x7c   :  { %1113 = vmatpush.bf16.msra.mxu2 %v2924_v15  ;;  %v2959_v15 = vld [vmem:[#allocation5 + $0x88] sm:$0xf] }
  0x7d   :  { %1126 = vmatpush.bf16.msra.mxu3 %v3052_v19  ;;  %v3928_v19 = vld [vmem:[#allocation5 + $0x194] sm:$0xf0]  ;;  %v2960_v24 = vor.u32 %v3896_v16, %v2959_v15  ;;  %v3024_v15 = vor.u32 %v3912_v4, %v3023_v3 }
  0x7e   :  { %1088 = vmatpush.bf16.msra.mxu0 %v2904_v26  ;;  %v3088_v25 = vor.u32 %v3928_v19, %v3087_v17  ;;  %v2964_v26 = vor.u32 %v3894_v20, %v2961_v21  ;;  %v3028_v17 = vor.u32 %v3910_v8, %v3025_v9  ;;  %v3327_v19 = vld [vmem:[#allocation7 + $0x170] sm:$0xf]  ;;  %v3988_v20 = vld [vmem:[#allocation7 + $0x174] sm:$0xf0]  ;;  %v3191_v21 = vld [vmem:[#allocation7 + $0x60] sm:$0xf] }
  0x7f   :  { %1101 = vmatpush.bf16.msra.mxu1 %v3032_v30  ;;  %v3092_v30 = vor.u32 %v3926_v22, %v3089_v23  ;;  %v3954_v22 = vld [vmem:[#allocation7 + $0x64] sm:$0xf0]  ;;  %v4000_v3 = vld [vmem:[#allocation7 + $0x1d4] sm:$0xf0]  ;;  %v3295_v9 = vld [vmem:[#allocation7 + $0x130] sm:$0xf] }
  0x80   :  { %1114 = vmatpush.bf16.msra.mxu2 %v2908_v31  ;;  %v3924_v31 = vld [vmem:[#allocation5 + $0x174] sm:$0xf0]  ;;  %v3192_v27 = vor.u32 %v3954_v22, %v3191_v21  ;;  %v3287_v21 = vld [vmem:[#allocation7 + $0x120] sm:$0xf]  ;;  %v3978_v22 = vld [vmem:[#allocation7 + $0x124] sm:$0xf0] }
  0x81   :  { %1127 = vmatpush.bf16.msra.mxu3 %v3036_v35  ;;  %v3073_v35 = vld [vmem:[#allocation5 + $0x178] sm:$0xf0]  ;;  %v3072_v37 = vor.u32 %v3924_v31, %v3071_v29  ;;  %v3986_v29 = vld [vmem:[#allocation7 + $0x164] sm:$0xf0]  ;;  %v3952_v31 = vld [vmem:[#allocation7 + $0x54] sm:$0xf0] }
  0x82   :  { %1089 = vmatpush.bf16.msra.mxu0 %v2888_v40  ;;  %v3888_v40 = vld [vmem:[#allocation5 + $0x54] sm:$0xf0]  ;;  %v3076_v42 = vor.u32 %v3922_v34, %v3073_v35  ;;  %v3247_v34 = vld [vmem:[#allocation7 + $0xd0] sm:$0xf]  ;;  %s2616_s20 = sshll.u32 %s4544_s19, 4  ;;  %s2617_s20 = int_to_ptr.hbm [resolvable:$true] %s2616_s20 }
  0x83   :  { %1102 = vmatpush.bf16.msra.mxu1 %v3016_v44  ;;  %v3886_v44 = vld [vmem:[#allocation5 + $0x4c] sm:$0xf]  ;;  %v3968_v35 = vld [vmem:[#allocation7 + $0xd4] sm:$0xf0] }
  0x84   :  { %1115 = vmatpush.bf16.msra.mxu2 %v2892_v45  ;;  %v2929_v45 = vld [vmem:[#allocation5 + $0x58] sm:$0xf0] }
  0x85   :  { %1128 = vmatpush.bf16.msra.mxu3 %v3020_v48  ;;  %1090 = vmatmul.bf16.vlgmr.msra.gmra.mxu0 %v4460_v55  ;;  %v2928_v48 = vor.u32 %v3888_v40, %v2927_v39  ;;  %v2932_v49 = vor.u32 %v3886_v44, %v2929_v45  ;;  %v3311_v40 = vld [vmem:[#allocation7 + $0x150] sm:$0xf]  ;;  %v3248_v44 = vor.u32 %v3968_v35, %v3247_v34  ;;  %v3239_v45 = vld [vmem:[#allocation7 + $0xc0] sm:$0xf]  ;;  %v3976_v34 = vld [vmem:[#allocation7 + $0x114] sm:$0xf0] }
  0x86   :  { %1134 = vmatpush.bf16.msrb.mxu0 %v3008_v56  ;;  %1103 = vmatmul.bf16.vlgmr.msra.gmra.mxu1 %v4462_v61  ;;  %v3056_v56 = vor.u32 %v3920_v43, %v3055_v41  ;;  %v3984_v41 = vld [vmem:[#allocation7 + $0x154] sm:$0xf0]  ;;  %v3950_v43 = vld [vmem:[#allocation7 + $0x44] sm:$0xf0] }
  0x87   :  { %1147 = vmatpush.bf16.msrb.mxu1 %v3136_v50  ;;  %1116 = vmatmul.bf16.vlgmr.msra.gmra.mxu2 %v4460_v55  ;;  %v2911_v50 = vld [vmem:[#allocation5 + $0x28] sm:$0xf] }
  0x88   :  { %1160 = vmatpush.bf16.msrb.mxu2 %v3012_v51  ;;  %1129 = vmatmul.bf16.vlgmr.msra.gmra.mxu3 %v4462_v61  ;;  %v3884_v51 = vld [vmem:[#allocation5 + $0x34] sm:$0xf0] }
  0x89   :  { %1173 = vmatpush.bf16.msrb.mxu3 %v3140_v54  ;;  %v3882_v54 = vld [vmem:[#allocation5 + $0x2c] sm:$0xf]  ;;  %v2912_v62 = vor.u32 %v3884_v51, %v2911_v50  ;;  %v3948_v50 = vld [vmem:[#allocation7 + $0x34] sm:$0xf0]  ;;  %v3240_v51 = vor.u32 %v3966_v46, %v3239_v45  ;;  %v3969_v45 = vld [vmem:[#allocation7 + $0xe4] sm:$0xf] }
  0x8a   :  { %1135 = vmatpush.bf16.msrb.mxu0 %v2992_v0  ;;  %v3040_v0 = vor.u32 %v3916_v53, %v3039_v58  ;;  %v3231_v58 = vld [vmem:[#allocation7 + $0xb0] sm:$0xf] }
  0x8b   :  { %1148 = vmatpush.bf16.msrb.mxu1 %v3120_v1  ;;  %v2916_v1 = vor.u32 %v3882_v54, %v2913_v57  ;;  %v3159_v54 = vld [vmem:[#allocation7 + $0x20] sm:$0xf]  ;;  %v3946_v57 = vld [vmem:[#allocation7 + $0x24] sm:$0xf0] }
  0x8c   :  { %1161 = vmatpush.bf16.msrb.mxu2 %v2996_v2  ;;  %v3880_v2 = vld [vmem:[#allocation5 + $0x14] sm:$0xf0]  ;;  %v3160_v4 = vor.u32 %v3946_v57, %v3159_v54 }
  0x8d   :  { %1174 = vmatpush.bf16.msrb.mxu3 %v3124_v6  ;;  %v3878_v6 = vld [vmem:[#allocation5 + $0xc] sm:$0xf]  ;;  %v4475_v54 = vld [vmem:[%s4528_s3] sm:$0xf] }
  0x8e   :  { %1136 = vmatpush.bf16.msrb.mxu0 %v2976_v12  ;;  %v2896_v12 = vor.u32 %v3880_v2, %v2895_v63  ;;  %v2900_v16 = vor.u32 %v3878_v6, %v2897_v7  ;;  %v3223_v63 = vld [vmem:[#allocation7 + $0xa0] sm:$0xf]  ;;  %v3375_v2 = vld [vmem:[#allocation7 + $0x1d0] sm:$0xf]  ;;  %v3944_v7 = vld [vmem:[#allocation7 + $0x14] sm:$0xf0] }
  0x8f   :  { %1149 = vmatpush.bf16.msrb.mxu1 %v3104_v13  ;;  %v3263_v13 = vld [vmem:[#allocation7 + $0xf0] sm:$0xf]  ;;  %v3376_v6 = vor.u32 %v4000_v3, %v3375_v2  ;;  %v235_v2 = vperm.slane %v4475_v54, 0 }
  0x90   :  { %1162 = vmatpush.bf16.msrb.mxu2 %v2980_v14  ;;  %v3972_v14 = vld [vmem:[#allocation7 + $0xf4] sm:$0xf0] }
  0x91   :  { %1175 = vmatpush.bf16.msrb.mxu3 %v3108_v18  ;;  %v3200_v18 = vor.u32 %v3956_v11, %v3199_v10  ;;  %v3264_v23 = vor.u32 %v3972_v14, %v3263_v13  ;;  %v3980_v10 = vld [vmem:[#allocation7 + $0x134] sm:$0xf0]  ;;  %v3215_v11 = vld [vmem:[#allocation7 + $0x90] sm:$0xf]  ;;  %v3143_v14 = vld [vmem:[#allocation7] sm:$0xf] }
  0x92   :  { %1137 = vmatpush.bf16.msrb.mxu0 %v2960_v24  ;;  %v3255_v24 = vld [vmem:[#allocation7 + $0xe0] sm:$0xf]  ;;  %v3296_v13 = vor.u32 %v3980_v10, %v3295_v9  ;;  %v3990_v10 = vld [vmem:[#allocation7 + $0x184] sm:$0xf0] }
  0x93   :  { %1150 = vmatpush.bf16.msrb.mxu1 %v3088_v25  ;;  %v3970_v25 = vld [vmem:[#allocation7 + $0xe4] sm:$0xf0]  ;;  %v3335_v9 = vld [vmem:[#allocation7 + $0x180] sm:$0xf] }
  0x94   :  { %1163 = vmatpush.bf16.msrb.mxu2 %v2964_v26  ;;  %v3328_v26 = vor.u32 %v3988_v20, %v3327_v19  ;;  %v3256_v32 = vor.u32 %v3970_v25, %v3255_v24  ;;  %v3955_v19 = vld [vmem:[#allocation7 + $0x74] sm:$0xf]  ;;  %v3207_v25 = vld [vmem:[#allocation7 + $0x80] sm:$0xf] }
  0x95   :  { %1176 = vmatpush.bf16.msrb.mxu3 %v3092_v30  ;;  %v3183_v30 = vld [vmem:[#allocation7 + $0x50] sm:$0xf] }
  0x96   :  { %1138 = vmatpush.bf16.msrb.mxu0 %v2944_v36  ;;  %v4004_v36 = vld [vmem:[#allocation7 + $0x1f4] sm:$0xf0]  ;;  %v3184_v39 = vor.u32 %v3952_v31, %v3183_v30  ;;  %v3265_v31 = vld [vmem:[#allocation7 + $0xf8] sm:$0xf0] }
  0x97   :  { %1151 = vmatpush.bf16.msrb.mxu1 %v3072_v37  ;;  %v3320_v37 = vor.u32 %v3986_v29, %v3319_v28  ;;  %v3958_v28 = vld [vmem:[#allocation7 + $0x84] sm:$0xf0]  ;;  %v3971_v29 = vld [vmem:[#allocation7 + $0xf4] sm:$0xf]  ;;  %v3996_v30 = vld [vmem:[#allocation7 + $0x1b4] sm:$0xf0] }
  0x98   :  { %1164 = vmatpush.bf16.msrb.mxu2 %v2948_v38  ;;  %v3392_v38 = vor.u32 %v4004_v36, %v3391_v33  ;;  %v3279_v33 = vld [vmem:[#allocation7 + $0x110] sm:$0xf] }
  0x99   :  { %1177 = vmatpush.bf16.msrb.mxu3 %v3076_v42  ;;  %v3175_v42 = vld [vmem:[#allocation7 + $0x40] sm:$0xf]  ;;  %v3280_v36 = vor.u32 %v3976_v34, %v3279_v33  ;;  %v3161_v33 = vld [vmem:[#allocation7 + $0x28] sm:$0xf0] }
  0x9a   :  { %1139 = vmatpush.bf16.msrb.mxu0 %v2928_v48  ;;  %v4002_v48 = vld [vmem:[#allocation7 + $0x1e4] sm:$0xf0] }
  0x9b   :  { %1152 = vmatpush.bf16.msrb.mxu1 %v3056_v56  ;;  %v3384_v56 = vor.u32 %v4002_v48, %v3383_v47  ;;  %v3257_v47 = vld [vmem:[#allocation7 + $0xe8] sm:$0xf0]  ;;  %v3987_v48 = vld [vmem:[#allocation7 + $0x174] sm:$0xf] }
  0x9c   :  { %1165 = vmatpush.bf16.msrb.mxu2 %v2932_v49  ;;  %v3167_v49 = vld [vmem:[#allocation7 + $0x30] sm:$0xf]  ;;  %v3260_v57 = vor.u32 %v3969_v45, %v3257_v47  ;;  %v3999_v45 = vld [vmem:[#allocation7 + $0x1d4] sm:$0xf] }
  0x9d   :  { %1178 = vmatpush.bf16.msrb.mxu3 %v3060_v52  ;;  %v3964_v52 = vld [vmem:[#allocation7 + $0xb4] sm:$0xf0]  ;;  %v3168_v53 = vor.u32 %v3948_v50, %v3167_v49  ;;  %v3343_v49 = vld [vmem:[#allocation7 + $0x190] sm:$0xf] }
  0x9e   :  { %1140 = vmatpush.bf16.msrb.mxu0 %v2912_v62  ;;  %v3232_v59 = vor.u32 %v3964_v52, %v3231_v58  ;;  %v3982_v62 = vld [vmem:[#allocation7 + $0x144] sm:$0xf0]  ;;  %v3992_v50 = vld [vmem:[#allocation7 + $0x194] sm:$0xf0]  ;;  %v3951_v58 = vld [vmem:[#allocation7 + $0x54] sm:$0xf] }
  0x9f   :  { %1153 = vmatpush.bf16.msrb.mxu1 %v3040_v0  ;;  %v3962_v0 = vld [vmem:[#allocation7 + $0xa4] sm:$0xf0]  ;;  %v3185_v52 = vld [vmem:[#allocation7 + $0x58] sm:$0xf0] }
  0xa0   :  { %1166 = vmatpush.bf16.msrb.mxu2 %v2916_v1  ;;  %v3304_v1 = vor.u32 %v3982_v62, %v3303_v60  ;;  %v3224_v8 = vor.u32 %v3962_v0, %v3223_v63  ;;  %v3985_v60 = vld [vmem:[#allocation7 + $0x164] sm:$0xf]  ;;  %v3321_v62 = vld [vmem:[#allocation7 + $0x168] sm:$0xf0]  ;;  %v3967_v63 = vld [vmem:[#allocation7 + $0xd4] sm:$0xf] }
  0xa1   :  { %1179 = vmatpush.bf16.msrb.mxu3 %v3044_v5  ;;  %v3151_v5 = vld [vmem:[#allocation7 + $0x10] sm:$0xf]  ;;  %v3249_v0 = vld [vmem:[#allocation7 + $0xd8] sm:$0xf0]  ;;  %v3324_v3 = vor.u32 %v3985_v60, %v3321_v62 }
  0xa2   :  { %1141 = vmatpush.bf16.msrb.mxu0 %v2896_v12  ;;  %v3960_v12 = vld [vmem:[#allocation7 + $0x94] sm:$0xf0]  ;;  %v3217_v60 = vld [vmem:[#allocation7 + $0x98] sm:$0xf0] }
  0xa3   :  { %1154 = vmatpush.bf16.msrb.mxu1 %v3024_v15  ;;  %v3942_v15 = vld [vmem:[#allocation7 + $0x4] sm:$0xf0]  ;;  %v3216_v24 = vor.u32 %v3960_v12, %v3215_v11  ;;  %v3336_v11 = vor.u32 %v3990_v10, %v3335_v9  ;;  %v4003_v12 = vld [vmem:[#allocation7 + $0x1f4] sm:$0xf]  ;;  %v3977_v10 = vld [vmem:[#allocation7 + $0x124] sm:$0xf] }
  0xa4   :  { %1167 = vmatpush.bf16.msrb.mxu2 %v2900_v16  ;;  %v3367_v16 = vld [vmem:[#allocation7 + $0x1c0] sm:$0xf]  ;;  %v3144_v35 = vor.u32 %v3942_v15, %v3143_v14  ;;  %v3947_v15 = vld [vmem:[#allocation7 + $0x34] sm:$0xf] }
  0xa5   :  { %1180 = vmatpush.bf16.msrb.mxu3 %v3028_v17  ;;  %1142 = vmatmul.bf16.vlgmr.msrb.gmra.mxu0 %v4460_v55  ;;  %v3998_v17 = vld [vmem:[#allocation7 + $0x1c4] sm:$0xf0] }
  0xa6   :  { %1592 = vmatpush.bf16.msra.mxu0 %v3200_v18  ;;  %1155 = vmatmul.bf16.vlgmr.msrb.gmra.mxu1 %v4462_v61  ;;  %v3152_v18 = vor.u32 %v3944_v7, %v3151_v5  ;;  %v3368_v20 = vor.u32 %v3998_v17, %v3367_v16  ;;  %v3177_v5 = vld [vmem:[#allocation7 + $0x48] sm:$0xf0]  ;;  %v3965_v7 = vld [vmem:[#allocation7 + $0xc4] sm:$0xf] }
  0xa7   :  { %1605 = vmatpush.bf16.msra.mxu1 %v3264_v23  ;;  %1168 = vmatmul.bf16.vlgmr.msrb.gmra.mxu2 %v4460_v55  ;;  %v3312_v55 = vor.u32 %v3984_v41, %v3311_v40  ;;  %v3201_v23 = vld [vmem:[#allocation7 + $0x78] sm:$0xf0]  ;;  %v3953_v40 = vld [vmem:[#allocation7 + $0x64] sm:$0xf]  ;;  %v3208_v41 = vor.u32 %v3958_v28, %v3207_v25 }
  0xa8   :  { %1181 = vmatmul.bf16.vlgmr.msrb.gmra.mxu3 %v4462_v61  ;;  %1618 = vmatpush.bf16.msra.mxu2 %v3328_v26  ;;  %v3176_v61 = vor.u32 %v3950_v43, %v3175_v42  ;;  %v3288_v26 = vor.u32 %v3978_v22, %v3287_v21  ;;  %v3271_v42 = vld [vmem:[#allocation7 + $0x100] sm:$0xf]  ;;  %v3193_v43 = vld [vmem:[#allocation7 + $0x68] sm:$0xf0]  ;;  %v3313_v21 = vld [vmem:[#allocation7 + $0x158] sm:$0xf0] }
  0xa9   :  { %1631 = vmatpush.bf16.msra.mxu3 %v3392_v38  ;;  %v3994_v38 = vld [vmem:[#allocation7 + $0x1a4] sm:$0xf0]  ;;  %v3233_v25 = vld [vmem:[#allocation7 + $0xb8] sm:$0xf0]  ;;  %v4001_v28 = vld [vmem:[#allocation7 + $0x1e4] sm:$0xf] }
  0xaa   :  { %1593 = vmatpush.bf16.msra.mxu0 %v3192_v27  ;;  %v3359_v27 = vld [vmem:[#allocation7 + $0x1b0] sm:$0xf] }
  0xab   :  { %1606 = vmatpush.bf16.msra.mxu1 %v3256_v32  ;;  %v3360_v32 = vor.u32 %v3996_v30, %v3359_v27  ;;  %v236_v27 = vperm.slane %v4475_v54, 1 }
  0xac   :  { %1619 = vmatpush.bf16.msra.mxu2 %v3320_v37  ;;  %v3351_v37 = vld [vmem:[#allocation7 + $0x1a0] sm:$0xf] }
  0xad   :  { %1632 = vmatpush.bf16.msra.mxu3 %v3384_v56  ;;  %v3352_v46 = vor.u32 %v3994_v38, %v3351_v37  ;;  %v3981_v37 = vld [vmem:[#allocation7 + $0x144] sm:$0xf]  ;;  %v3305_v38 = vld [vmem:[#allocation7 + $0x148] sm:$0xf0] }
  0xae   :  { %1594 = vmatpush.bf16.msra.mxu0 %v3184_v39  ;;  %v3204_v39 = vor.u32 %v3955_v19, %v3201_v23 }
  0xaf   :  { %1607 = vmatpush.bf16.msra.mxu1 %v3248_v44  ;;  %v3268_v44 = vor.u32 %v3971_v29, %v3265_v31  ;;  %v3385_v29 = vld [vmem:[#allocation7 + $0x1e8] sm:$0xf0] }
  0xb0   :  { %1620 = vmatpush.bf16.msra.mxu2 %v3312_v55  ;;  %v3974_v55 = vld [vmem:[#allocation7 + $0x104] sm:$0xf0]  ;;  %v3388_v34 = vor.u32 %v4001_v28, %v3385_v29  ;;  %v3993_v29 = vld [vmem:[#allocation7 + $0x1a4] sm:$0xf] }
  0xb1   :  { %1633 = vmatpush.bf16.msra.mxu3 %v3376_v6  ;;  %v3272_v56 = vor.u32 %v3974_v55, %v3271_v42  ;;  %v3252_v6 = vor.u32 %v3967_v63, %v3249_v0  ;;  %v3308_v42 = vor.u32 %v3981_v37, %v3305_v38  ;;  %v3941_v0 = vld [vmem:[#allocation7 + $0x4] sm:$0xf]  ;;  %v3273_v38 = vld [vmem:[#allocation7 + $0x108] sm:$0xf0] }
  0xb2   :  { %1595 = vmatpush.bf16.msra.mxu0 %v3176_v61  ;;  %v3329_v61 = vld [vmem:[#allocation7 + $0x178] sm:$0xf0]  ;;  %v3973_v37 = vld [vmem:[#allocation7 + $0x104] sm:$0xf] }
  0xb3   :  { %1608 = vmatpush.bf16.msra.mxu1 %v3240_v51  ;;  %v3196_v51 = vor.u32 %v3953_v40, %v3193_v43 }
  0xb4   :  { %1621 = vmatpush.bf16.msra.mxu2 %v3304_v1  ;;  %v3188_v1 = vor.u32 %v3951_v58, %v3185_v52  ;;  %v3979_v52 = vld [vmem:[#allocation7 + $0x134] sm:$0xf] }
  0xb5   :  { %1634 = vmatpush.bf16.msra.mxu3 %v3368_v20  ;;  %v3983_v20 = vld [vmem:[#allocation7 + $0x154] sm:$0xf] }
  0xb6   :  { %1596 = vmatpush.bf16.msra.mxu0 %v3168_v53  ;;  %v3332_v53 = vor.u32 %v3987_v48, %v3329_v61  ;;  %v3943_v48 = vld [vmem:[#allocation7 + $0x14] sm:$0xf] }
  0xb7   :  { %1609 = vmatpush.bf16.msra.mxu1 %v3232_v59  ;;  %v3344_v59 = vor.u32 %v3992_v50, %v3343_v49  ;;  %v3153_v50 = vld [vmem:[#allocation7 + $0x18] sm:$0xf0] }
  0xb8   :  { %1622 = vmatpush.bf16.msra.mxu2 %v3296_v13  ;;  %v3393_v13 = vld [vmem:[#allocation7 + $0x1f8] sm:$0xf0] }
  0xb9   :  { %1635 = vmatpush.bf16.msra.mxu3 %v3360_v32  ;;  %v3396_v16 = vor.u32 %v4003_v12, %v3393_v13  ;;  %v3945_v32 = vld [vmem:[#allocation7 + $0x24] sm:$0xf] }
  0xba   :  { %1597 = vmatpush.bf16.msra.mxu0 %v3160_v4  ;;  %v3949_v4 = vld [vmem:[#allocation7 + $0x44] sm:$0xf]  ;;  %v3164_v47 = vor.u32 %v3945_v32, %v3161_v33  ;;  %v3511_v32 = vld [vmem:[#allocation8 + $0xe0] sm:$0xf] }
  0xbb   :  { %1610 = vmatpush.bf16.msra.mxu1 %v3224_v8  ;;  %v3241_v8 = vld [vmem:[#allocation7 + $0xc8] sm:$0xf0]  ;;  %v3180_v14 = vor.u32 %v3949_v4, %v3177_v5  ;;  %v3455_v4 = vld [vmem:[#allocation8 + $0x70] sm:$0xf] }
  0xbc   :  { %1623 = vmatpush.bf16.msra.mxu2 %v3288_v26  ;;  %v3244_v19 = vor.u32 %v3965_v7, %v3241_v8  ;;  %v3316_v26 = vor.u32 %v3983_v20, %v3313_v21  ;;  %v3369_v5 = vld [vmem:[#allocation7 + $0x1c8] sm:$0xf0]  ;;  %v4020_v7 = vld [vmem:[#allocation8 + $0x74] sm:$0xf0]  ;;  %v3995_v20 = vld [vmem:[#allocation7 + $0x1b4] sm:$0xf] }
  0xbd   :  { %1636 = vmatpush.bf16.msra.mxu3 %v3352_v46  ;;  %v3377_v46 = vld [vmem:[#allocation7 + $0x1d8] sm:$0xf0] }
  0xbe   :  { %1598 = vmatpush.bf16.msra.mxu0 %v3152_v18  ;;  %v3169_v18 = vld [vmem:[#allocation7 + $0x38] sm:$0xf0]  ;;  %v3380_v61 = vor.u32 %v3999_v45, %v3377_v46  ;;  %v3503_v46 = vld [vmem:[#allocation8 + $0xd0] sm:$0xf] }
  0xbf   :  { %1611 = vmatpush.bf16.msra.mxu1 %v3216_v24  ;;  %v3963_v24 = vld [vmem:[#allocation7 + $0xb4] sm:$0xf]  ;;  %v3172_v31 = vor.u32 %v3947_v15, %v3169_v18  ;;  %v3209_v15 = vld [vmem:[#allocation7 + $0x88] sm:$0xf0]  ;;  %v3361_v21 = vld [vmem:[#allocation7 + $0x1b8] sm:$0xf0] }
  0xc0   :  { %1624 = vmatpush.bf16.msra.mxu2 %v3280_v36  ;;  %v3961_v36 = vld [vmem:[#allocation7 + $0xa4] sm:$0xf]  ;;  %v3345_v45 = vld [vmem:[#allocation7 + $0x198] sm:$0xf0] }
  0xc1   :  { %1637 = vmatpush.bf16.msra.mxu3 %v3344_v59  ;;  %v3959_v59 = vld [vmem:[#allocation7 + $0x94] sm:$0xf] }
  0xc2   :  { %1599 = vmatpush.bf16.msra.mxu0 %v3144_v35  ;;  %v572_v17 = vpop.f32.mrf.mxu0  ;;  %v3236_v35 = vor.u32 %v3963_v24, %v3233_v25  ;;  %v3220_v8 = vor.u32 %v3959_v59, %v3217_v60  ;;  %v3975_v24 = vld [vmem:[#allocation7 + $0x114] sm:$0xf]  ;;  %v3281_v25 = vld [vmem:[#allocation7 + $0x118] sm:$0xf0] }
  0xc3   :  { %1612 = vmatpush.bf16.msra.mxu1 %v3208_v41  ;;  %v573_v22 = vadd.f32 %v572_v17, %v235_v2  ;;  %v585_v23 = vpop.f32.mrf.mxu1  ;;  %v3225_v41 = vld [vmem:[#allocation7 + $0xa8] sm:$0xf0]  ;;  %v3156_v2 = vor.u32 %v3943_v48, %v3153_v50  ;;  %v3284_v33 = vor.u32 %v3975_v24, %v3281_v25  ;;  %v237_v48 = vperm.slane %v4475_v54, 2  ;;  %v4014_v50 = vld [vmem:[#allocation8 + $0x44] sm:$0xf0] }
  0xc4   :  { %1625 = vmatpush.bf16.msra.mxu2 %v3272_v56  ;;  %v3228_v58 = vor.u32 %v3961_v36, %v3225_v41  ;;  %v3439_v41 = vld [vmem:[#allocation8 + $0x50] sm:$0xf]  ;;  %v4008_v24 = vld [vmem:[#allocation8 + $0x14] sm:$0xf0] }
  0xc5   :  { %1638 = vmatpush.bf16.msra.mxu3 %v3336_v11  ;;  %v586_v30 = vadd.f32 %v585_v23, %v573_v22  ;;  %v3289_v11 = vld [vmem:[#allocation7 + $0x128] sm:$0xf0]  ;;  %v3364_v23 = vor.u32 %v3995_v20, %v3361_v21 }
  0xc6   :  { %1644 = vmatpush.bf16.msrb.mxu0 %v3204_v39  ;;  %v3292_v17 = vor.u32 %v3977_v10, %v3289_v11  ;;  %v3479_v11 = vld [vmem:[#allocation8 + $0xa0] sm:$0xf] }
  0xc7   :  { %1657 = vmatpush.bf16.msrb.mxu1 %v3268_v44  ;;  %vm667_vm0 = vcmp.gt.f32.partialorder %v586_v30, 0.0  ;;  %v671_v39 = vmul.f32 0.01, %v586_v30 }
  0xc8   :  { %1670 = vmatpush.bf16.msrb.mxu2 %v3332_v53  ;;  %v3297_v53 = vld [vmem:[#allocation7 + $0x138] sm:$0xf0] }
  0xc9   :  { %1683 = vmatpush.bf16.msrb.mxu3 %v3396_v16  ;;  %v675_v55 = vsel %vm667_vm0, %v586_v30, %v671_v39  ;;  %v3300_v62 = vor.u32 %v3979_v52, %v3297_v53  ;;  %v3519_v16 = vld [vmem:[#allocation8 + $0xf0] sm:$0xf]  ;;  %v4018_v30 = vld [vmem:[#allocation8 + $0x64] sm:$0xf0]  ;;  %v3989_v53 = vld [vmem:[#allocation7 + $0x184] sm:$0xf] }
  0xca   :  { %1645 = vmatpush.bf16.msrb.mxu0 %v3196_v51  ;;  %v598_v40 = vpop.f32.mrf.mxu2  ;;  %v4479_v56 = vpack.c.bf16 %v675_v55, %v675_v55  ;;  %v574_v51 = vpop.f32.mrf.mxu0  ;;  %v4032_v55 = vld [vmem:[#allocation8 + $0xd4] sm:$0xf0]  ;;  %v4030_v52 = vld [vmem:[#allocation8 + $0xc4] sm:$0xf0] }
  0xcb   :  { %1658 = vmatpush.bf16.msrb.mxu1 %v3260_v57  ;;  %v599_v43 = vadd.f32 %v598_v40, %v236_v27  ;;  %v611_v44 = vpop.f32.mrf.mxu3  ;;  %v587_v57 = vpop.f32.mrf.mxu1  ;;  %v3447_v27 = vld [vmem:[#allocation8 + $0x60] sm:$0xf]  ;;  %v3991_v40 = vld [vmem:[#allocation7 + $0x194] sm:$0xf]  ;;  %v3504_v51 = vor.u32 %v4032_v55, %v3503_v46 }
  0xcc   :  { %1671 = vmatpush.bf16.msrb.mxu2 %v3324_v3  ;;  %1600 = vmatmul.bf16.vlgmr.msra.gmra.mxu0 %v4479_v56  ;;  %v3145_v3 = vld [vmem:[#allocation7 + $0x8] sm:$0xf0]  ;;  %v3448_v39 = vor.u32 %v4018_v30, %v3447_v27  ;;  %v4050_v27 = vld [vmem:[#allocation8 + $0x164] sm:$0xf0]  ;;  %v4024_v30 = vld [vmem:[#allocation8 + $0x94] sm:$0xf0] }
  0xcd   :  { %1684 = vmatpush.bf16.msrb.mxu3 %v3388_v34  ;;  %v612_v49 = vadd.f32 %v611_v44, %v599_v43  ;;  %v3148_v22 = vor.u32 %v3941_v0, %v3145_v3  ;;  %v3353_v34 = vld [vmem:[#allocation7 + $0x1a8] sm:$0xf0]  ;;  %v3276_v44 = vor.u32 %v3973_v37, %v3273_v38  ;;  %v4012_v0 = vld [vmem:[#allocation8 + $0x34] sm:$0xf0]  ;;  %v3647_v37 = vld [vmem:[#allocation8 + $0x1f0] sm:$0xf] }
  0xce   :  { %1646 = vmatpush.bf16.msrb.mxu0 %v3188_v1  ;;  %v3997_v1 = vld [vmem:[#allocation7 + $0x1c4] sm:$0xf]  ;;  %v3356_v36 = vor.u32 %v3993_v29, %v3353_v34  ;;  %v3337_v57 = vld [vmem:[#allocation7 + $0x188] sm:$0xf0]  ;;  %v3471_v29 = vld [vmem:[#allocation8 + $0x90] sm:$0xf] }
  0xcf   :  { %1659 = vmatpush.bf16.msrb.mxu1 %v3252_v6  ;;  %vm668_vm1 = vcmp.gt.f32.partialorder %v612_v49, 0.0  ;;  %v672_v63 = vmul.f32 0.01, %v612_v49  ;;  %v3372_v9 = vor.u32 %v3997_v1, %v3369_v5  ;;  %v3340_v59 = vor.u32 %v3989_v53, %v3337_v57  ;;  %v4028_v5 = vld [vmem:[#allocation8 + $0xb4] sm:$0xf0] }
  0xd0   :  { %1672 = vmatpush.bf16.msrb.mxu2 %v3316_v26  ;;  %v3456_v26 = vor.u32 %v4020_v7, %v3455_v4  ;;  %v3487_v4 = vld [vmem:[#allocation8 + $0xb0] sm:$0xf]  ;;  %v4068_v38 = vld [vmem:[#allocation8 + $0x1f4] sm:$0xf0] }
  0xd1   :  { %1685 = vmatpush.bf16.msrb.mxu3 %v3380_v61  ;;  %v676_v6 = vsel %vm668_vm1, %v612_v49, %v672_v63  ;;  %v3431_v49 = vld [vmem:[#allocation8 + $0x40] sm:$0xf]  ;;  %v3423_v63 = vld [vmem:[#allocation8 + $0x30] sm:$0xf]  ;;  %v3488_v10 = vor.u32 %v4028_v5, %v3487_v4  ;;  %v3648_v55 = vor.u32 %v4068_v38, %v3647_v37  ;;  %v3513_v4 = vld [vmem:[#allocation8 + $0xe8] sm:$0xf0] }
  0xd2   :  { %1647 = vmatpush.bf16.msrb.mxu0 %v3180_v14  ;;  %v4482_v12 = vpack.c.bf16 %v676_v6, %v676_v6  ;;  %v600_v13 = vpop.f32.mrf.mxu2  ;;  %v3957_v14 = vld [vmem:[#allocation7 + $0x84] sm:$0xf]  ;;  %v3432_v60 = vor.u32 %v4014_v50, %v3431_v49  ;;  %v238_v6 = vperm.slane %v4475_v54, 3  ;;  %v3424_v7 = vor.u32 %v4012_v0, %v3423_v63  ;;  %v3449_v0 = vld [vmem:[#allocation8 + $0x68] sm:$0xf0] }
  0xd3   :  { %1660 = vmatpush.bf16.msrb.mxu1 %v3244_v19  ;;  %v613_v18 = vpop.f32.mrf.mxu3  ;;  %v4036_v19 = vld [vmem:[#allocation8 + $0xf4] sm:$0xf0]  ;;  %v3212_v28 = vor.u32 %v3957_v14, %v3209_v15  ;;  %v3583_v13 = vld [vmem:[#allocation8 + $0x170] sm:$0xf]  ;;  %v4017_v63 = vld [vmem:[#allocation8 + $0x64] sm:$0xf] }
  0xd4   :  { %1673 = vmatpush.bf16.msrb.mxu2 %v3308_v42  ;;  %1613 = vmatmul.bf16.vlgmr.msra.gmra.mxu1 %v4482_v12  ;;  %v4016_v42 = vld [vmem:[#allocation8 + $0x54] sm:$0xf0]  ;;  %v3425_v37 = vld [vmem:[#allocation8 + $0x38] sm:$0xf0] }
  0xd5   :  { %1686 = vmatpush.bf16.msrb.mxu3 %v3372_v9  ;;  %v3440_v61 = vor.u32 %v4016_v42, %v3439_v41  ;;  %v4010_v9 = vld [vmem:[#allocation8 + $0x24] sm:$0xf0]  ;;  %v4052_v14 = vld [vmem:[#allocation8 + $0x174] sm:$0xf0]  ;;  %v3472_v41 = vor.u32 %v4024_v30, %v3471_v29 }
  0xd6   :  { %1648 = vmatpush.bf16.msrb.mxu0 %v3172_v31  ;;  %v3520_v31 = vor.u32 %v4036_v19, %v3519_v16  ;;  %v4026_v16 = vld [vmem:[#allocation8 + $0xa4] sm:$0xf0]  ;;  %v3584_v20 = vor.u32 %v4052_v14, %v3583_v13  ;;  %v4048_v42 = vld [vmem:[#allocation8 + $0x154] sm:$0xf0] }
  0xd7   :  { %1661 = vmatpush.bf16.msrb.mxu1 %v3236_v35  ;;  %v4034_v35 = vld [vmem:[#allocation8 + $0xe4] sm:$0xf0]  ;;  %v3480_v25 = vor.u32 %v4026_v16, %v3479_v11  ;;  %v3441_v11 = vld [vmem:[#allocation8 + $0x58] sm:$0xf0] }
  0xd8   :  { %1674 = vmatpush.bf16.msrb.mxu2 %v3300_v62  ;;  %v3512_v43 = vor.u32 %v4034_v35, %v3511_v32  ;;  %v3399_v32 = vld [vmem:[#allocation8] sm:$0xf]  ;;  %v4019_v35 = vld [vmem:[#allocation8 + $0x74] sm:$0xf]  ;;  %v3505_v16 = vld [vmem:[#allocation8 + $0xd8] sm:$0xf0] }
  0xd9   :  { %1687 = vmatpush.bf16.msrb.mxu3 %v3364_v23 }
  0xda   :  { %1649 = vmatpush.bf16.msrb.mxu0 %v3164_v47  ;;  %v3348_v47 = vor.u32 %v3991_v40, %v3345_v45  ;;  %v4022_v45 = vld [vmem:[#allocation8 + $0x84] sm:$0xf0] }
  0xdb   :  { %1662 = vmatpush.bf16.msrb.mxu1 %v3228_v58  ;;  %v3495_v58 = vld [vmem:[#allocation8 + $0xc0] sm:$0xf] }
  0xdc   :  { %1675 = vmatpush.bf16.msrb.mxu2 %v3292_v17  ;;  %v3496_v1 = vor.u32 %v4030_v52, %v3495_v58  ;;  %v3639_v58 = vld [vmem:[#allocation8 + $0x1e0] sm:$0xf]  ;;  %v4066_v52 = vld [vmem:[#allocation8 + $0x1e4] sm:$0xf0] }
  0xdd   :  { %1688 = vmatpush.bf16.msrb.mxu3 %v3356_v36 }
  0xde   :  { %1650 = vmatpush.bf16.msrb.mxu0 %v3156_v2 }
  0xdf   :  { %1663 = vmatpush.bf16.msrb.mxu1 %v3220_v8  ;;  %v3415_v8 = vld [vmem:[#allocation8 + $0x20] sm:$0xf] }
  0xe0   :  { %1676 = vmatpush.bf16.msrb.mxu2 %v3284_v33  ;;  %v3416_v19 = vor.u32 %v4010_v9, %v3415_v8  ;;  %v4006_v33 = vld [vmem:[#allocation8 + $0x4] sm:$0xf0]  ;;  %v3551_v8 = vld [vmem:[#allocation8 + $0x130] sm:$0xf]  ;;  %v4044_v9 = vld [vmem:[#allocation8 + $0x134] sm:$0xf0] }
  0xe1   :  { %1689 = vmatpush.bf16.msrb.mxu3 %v3348_v47  ;;  %v4035_v47 = vld [vmem:[#allocation8 + $0xf4] sm:$0xf]  ;;  %v3400_v50 = vor.u32 %v4006_v33, %v3399_v32  ;;  %v4060_v32 = vld [vmem:[#allocation8 + $0x1b4] sm:$0xf0] }
  0xe2   :  { %1651 = vmatpush.bf16.msrb.mxu0 %v3148_v22  ;;  %v624_v62 = vpop.f32.mrf.mxu0 }
  0xe3   :  { %1664 = vmatpush.bf16.msrb.mxu1 %v3212_v28  ;;  %v625_v2 = vadd.f32 %v624_v62, %v237_v48  ;;  %v637_v3 = vpop.f32.mrf.mxu1  ;;  %v3521_v48 = vld [vmem:[#allocation8 + $0xf8] sm:$0xf0]  ;;  %v4046_v62 = vld [vmem:[#allocation8 + $0x144] sm:$0xf0] }
  0xe4   :  { %1677 = vmatpush.bf16.msrb.mxu2 %v3276_v44  ;;  %v3463_v44 = vld [vmem:[#allocation8 + $0x80] sm:$0xf] }
  0xe5   :  { %1652 = vmatmul.bf16.vlgmr.msrb.gmra.mxu0 %v4479_v56  ;;  %1690 = vmatpush.bf16.msrb.mxu3 %v3340_v59  ;;  %v638_v56 = vadd.f32 %v637_v3, %v625_v2  ;;  %v3464_v59 = vor.u32 %v4022_v45, %v3463_v44  ;;  %v3640_v2 = vor.u32 %v4066_v52, %v3639_v58  ;;  %v4033_v3 = vld [vmem:[#allocation8 + $0xe4] sm:$0xf]  ;;  %v3417_v58 = vld [vmem:[#allocation8 + $0x28] sm:$0xf0] }
  0xe6   :  { %2096 = vmatpush.bf16.msra.mxu0 %v3456_v26  ;;  %1665 = vmatmul.bf16.vlgmr.msrb.gmra.mxu1 %v4482_v12  ;;  %v3407_v12 = vld [vmem:[#allocation8 + $0x10] sm:$0xf]  ;;  %v3575_v26 = vld [vmem:[#allocation8 + $0x160] sm:$0xf]  ;;  %v3516_v13 = vor.u32 %v4033_v3, %v3513_v4 }
  0xe7   :  { %2109 = vmatpush.bf16.msra.mxu1 %v3520_v31  ;;  %vm669_vm2 = vcmp.gt.f32.partialorder %v638_v56, 0.0  ;;  %v673_v15 = vmul.f32 0.01, %v638_v56  ;;  %v3408_v34 = vor.u32 %v4008_v24, %v3407_v12  ;;  %v3576_v36 = vor.u32 %v4050_v27, %v3575_v26  ;;  %v4498_v12 = vld [vmem:[%s4530_s5] sm:$0xf] }
  0xe8   :  { %v3433_v24 = vld [vmem:[#allocation8 + $0x48] sm:$0xf0]  ;;  %v4029_v27 = vld [vmem:[#allocation8 + $0xc4] sm:$0xf]  ;;  %v754_v29 = vperm.slane %v4498_v12, 0  ;;  %v755_v44 = vperm.slane %v4498_v12, 1 }
  0xe9   :  { %v677_v17 = vsel %vm669_vm2, %v638_v56, %v673_v15  ;;  %v3631_v56 = vld [vmem:[#allocation8 + $0x1d0] sm:$0xf]  ;;  %v4031_v15 = vld [vmem:[#allocation8 + $0xd4] sm:$0xf] }
  0xea   :  { %2097 = vmatpush.bf16.msra.mxu0 %v3448_v39  ;;  %v650_v18 = vpop.f32.mrf.mxu2  ;;  %v4489_v21 = vpack.c.bf16 %v677_v17, %v677_v17  ;;  %v626_v23 = vpop.f32.mrf.mxu0  ;;  %v3567_v39 = vld [vmem:[#allocation8 + $0x150] sm:$0xf]  ;;  %v3552_v17 = vor.u32 %v4044_v9, %v3551_v8  ;;  %v3577_v8 = vld [vmem:[#allocation8 + $0x168] sm:$0xf0] }
  0xeb   :  { %2110 = vmatpush.bf16.msra.mxu1 %v3512_v43  ;;  %v651_v54 = vadd.f32 %v650_v18, %v238_v6  ;;  %v663_v22 = vpop.f32.mrf.mxu3  ;;  %v639_v28 = vpop.f32.mrf.mxu1  ;;  %v3457_v43 = vld [vmem:[#allocation8 + $0x78] sm:$0xf0]  ;;  %v4064_v6 = vld [vmem:[#allocation8 + $0x1d4] sm:$0xf0]  ;;  %v3623_v18 = vld [vmem:[#allocation8 + $0x1c0] sm:$0xf] }
  0xec   :  { %1626 = vmatmul.bf16.vlgmr.msra.gmra.mxu2 %v4489_v21  ;;  %v3460_v57 = vor.u32 %v4019_v35, %v3457_v43  ;;  %v3632_v14 = vor.u32 %v4064_v6, %v3631_v56  ;;  %v4013_v23 = vld [vmem:[#allocation8 + $0x44] sm:$0xf]  ;;  %v3497_v28 = vld [vmem:[#allocation8 + $0xc8] sm:$0xf0]  ;;  %v4040_v35 = vld [vmem:[#allocation8 + $0x114] sm:$0xf0] }
  0xed   :  { %v664_v31 = vadd.f32 %v663_v22, %v651_v54  ;;  %2122 = vmatpush.bf16.msra.mxu2 %v3584_v20  ;;  %v3543_v54 = vld [vmem:[#allocation8 + $0x120] sm:$0xf]  ;;  %v4042_v22 = vld [vmem:[#allocation8 + $0x124] sm:$0xf0]  ;;  %v3436_v33 = vor.u32 %v4013_v23, %v3433_v24  ;;  %v3500_v38 = vor.u32 %v4029_v27, %v3497_v28  ;;  %v4007_v56 = vld [vmem:[#allocation8 + $0x14] sm:$0xf] }
  0xee   :  { %2098 = vmatpush.bf16.msra.mxu0 %v3440_v61  ;;  %v3544_v30 = vor.u32 %v4042_v22, %v3543_v54  ;;  %v4005_v22 = vld [vmem:[#allocation8 + $0x4] sm:$0xf]  ;;  %v3401_v23 = vld [vmem:[#allocation8 + $0x8] sm:$0xf0] }
  0xef   :  { %2111 = vmatpush.bf16.msra.mxu1 %v3504_v51  ;;  %vm670_vm3 = vcmp.gt.f32.partialorder %v664_v31, 0.0  ;;  %v674_v40 = vmul.f32 0.01, %v664_v31  ;;  %v3568_v51 = vor.u32 %v4048_v42, %v3567_v39 }
  0xf1   :  { %v678_v46 = vsel %vm670_vm3, %v664_v31, %v674_v40  ;;  %2123 = vmatpush.bf16.msra.mxu2 %v3576_v36  ;;  %v3615_v31 = vld [vmem:[#allocation8 + $0x1b0] sm:$0xf]  ;;  %v4011_v36 = vld [vmem:[#allocation8 + $0x34] sm:$0xf] }
  0xf2   :  { %2099 = vmatpush.bf16.msra.mxu0 %v3432_v60  ;;  %v4492_v61 = vpack.c.bf16 %v678_v46, %v678_v46  ;;  %v652_v49 = vpop.f32.mrf.mxu2  ;;  %v3559_v60 = vld [vmem:[#allocation8 + $0x140] sm:$0xf]  ;;  %v4027_v40 = vld [vmem:[#allocation8 + $0xb4] sm:$0xf] }
  0xf3   :  { %2112 = vmatpush.bf16.msra.mxu1 %v3496_v1  ;;  %v665_v53 = vpop.f32.mrf.mxu3  ;;  %v3524_v1 = vor.u32 %v4035_v47, %v3521_v48  ;;  %v3560_v5 = vor.u32 %v4046_v62, %v3559_v60  ;;  %v3607_v46 = vld [vmem:[#allocation8 + $0x1a0] sm:$0xf]  ;;  %v3428_v47 = vor.u32 %v4011_v36, %v3425_v37  ;;  %v4009_v48 = vld [vmem:[#allocation8 + $0x24] sm:$0xf]  ;;  %v3481_v62 = vld [vmem:[#allocation8 + $0xa8] sm:$0xf0] }
  0xf4   :  { %1639 = vmatmul.bf16.vlgmr.msra.gmra.mxu3 %v4492_v61  ;;  %v3527_v49 = vld [vmem:[#allocation8 + $0x100] sm:$0xf]  ;;  %v4051_v53 = vld [vmem:[#allocation8 + $0x174] sm:$0xf]  ;;  %v4025_v60 = vld [vmem:[#allocation8 + $0xa4] sm:$0xf] }
  0xf5   :  { %2135 = vmatpush.bf16.msra.mxu3 %v3648_v55  ;;  %2124 = vmatpush.bf16.msra.mxu2 %v3568_v51  ;;  %v4058_v55 = vld [vmem:[#allocation8 + $0x1a4] sm:$0xf0]  ;;  %v3484_v6 = vor.u32 %v4025_v60, %v3481_v62  ;;  %v756_v62 = vperm.slane %v4498_v12, 2 }
  0xf6   :  { %2100 = vmatpush.bf16.msra.mxu0 %v3424_v7  ;;  %v3452_v7 = vor.u32 %v4017_v63, %v3449_v0  ;;  %v3599_v63 = vld [vmem:[#allocation8 + $0x190] sm:$0xf] }
  0xf7   :  { %2113 = vmatpush.bf16.msra.mxu1 %v3488_v10  ;;  %v4015_v10 = vld [vmem:[#allocation8 + $0x54] sm:$0xf] }
  0xf8   :  { %v3444_v20 = vor.u32 %v4015_v10, %v3441_v11 }
  0xf9   :  { %2136 = vmatpush.bf16.msra.mxu3 %v3640_v2  ;;  %2125 = vmatpush.bf16.msra.mxu2 %v3560_v5  ;;  %v4056_v2 = vld [vmem:[#allocation8 + $0x194] sm:$0xf0] }
  0xfa   :  { %2101 = vmatpush.bf16.msra.mxu0 %v3416_v19  ;;  %v4062_v19 = vld [vmem:[#allocation8 + $0x1c4] sm:$0xf0] }
  0xfb   :  { %2114 = vmatpush.bf16.msra.mxu1 %v3480_v25  ;;  %v3508_v25 = vor.u32 %v4031_v15, %v3505_v16  ;;  %v3624_v26 = vor.u32 %v4062_v19, %v3623_v18  ;;  %v3600_v15 = vor.u32 %v4056_v2, %v3599_v63  ;;  %v4023_v16 = vld [vmem:[#allocation8 + $0x94] sm:$0xf]  ;;  %v3591_v19 = vld [vmem:[#allocation8 + $0x180] sm:$0xf] }
  0xfc   :  { %1678 = vmatmul.bf16.vlgmr.msrb.gmra.mxu2 %v4489_v21  ;;  %v3616_v21 = vor.u32 %v4060_v32, %v3615_v31  ;;  %v3569_v31 = vld [vmem:[#allocation8 + $0x158] sm:$0xf0]  ;;  %v4039_v2 = vld [vmem:[#allocation8 + $0x114] sm:$0xf] }
  0xfd   :  { %2137 = vmatpush.bf16.msra.mxu3 %v3632_v14  ;;  %2126 = vmatpush.bf16.msra.mxu2 %v3552_v17  ;;  %v3409_v14 = vld [vmem:[#allocation8 + $0x18] sm:$0xf0] }
  0xfe   :  { %2102 = vmatpush.bf16.msra.mxu0 %v3408_v34  ;;  %v3535_v34 = vld [vmem:[#allocation8 + $0x110] sm:$0xf]  ;;  %v3473_v17 = vld [vmem:[#allocation8 + $0x98] sm:$0xf0]  ;;  %v3412_v27 = vor.u32 %v4007_v56, %v3409_v14 }
  0xff   :  { %2115 = vmatpush.bf16.msra.mxu1 %v3472_v41  ;;  %v3489_v41 = vld [vmem:[#allocation8 + $0xb8] sm:$0xf0]  ;;  %v3536_v45 = vor.u32 %v4040_v35, %v3535_v34  ;;  %v3476_v28 = vor.u32 %v4023_v16, %v3473_v17  ;;  %v3465_v34 = vld [vmem:[#allocation8 + $0x88] sm:$0xf0] }
 0x100   :  { %v3492_v52 = vor.u32 %v4027_v40, %v3489_v41  ;;  %v3404_v41 = vor.u32 %v4005_v22, %v3401_v23 }
 0x101   :  { %2138 = vmatpush.bf16.msra.mxu3 %v3624_v26  ;;  %2127 = vmatpush.bf16.msra.mxu2 %v3544_v30  ;;  %v3649_v26 = vld [vmem:[#allocation8 + $0x1f8] sm:$0xf0]  ;;  %v4047_v30 = vld [vmem:[#allocation8 + $0x154] sm:$0xf] }
 0x102   :  { %2103 = vmatpush.bf16.msra.mxu0 %v3400_v50  ;;  %v1091_v39 = vpop.f32.mrf.mxu0  ;;  %v4038_v50 = vld [vmem:[#allocation8 + $0x104] sm:$0xf0]  ;;  %v3572_v37 = vor.u32 %v4047_v30, %v3569_v31 }
 0x103   :  { %2116 = vmatpush.bf16.msra.mxu1 %v3464_v59  ;;  %v1092_v42 = vadd.f32 %v1091_v39, %v754_v29  ;;  %v1104_v43 = vpop.f32.mrf.mxu1  ;;  %v3608_v59 = vor.u32 %v4058_v55, %v3607_v46  ;;  %v4021_v29 = vld [vmem:[#allocation8 + $0x84] sm:$0xf]  ;;  %v3641_v39 = vld [vmem:[#allocation8 + $0x1e8] sm:$0xf0] }
 0x104   :  { %1691 = vmatmul.bf16.vlgmr.msrb.gmra.mxu3 %v4492_v61  ;;  %v3420_v61 = vor.u32 %v4009_v48, %v3417_v58  ;;  %v3633_v48 = vld [vmem:[#allocation8 + $0x1d8] sm:$0xf0] }
 0x105   :  { %v1105_v51 = vadd.f32 %v1104_v43, %v1092_v42  ;;  %2139 = vmatpush.bf16.msra.mxu3 %v3616_v21  ;;  %2128 = vmatpush.bf16.msra.mxu2 %v3536_v45  ;;  %v3468_v42 = vor.u32 %v4021_v29, %v3465_v34  ;;  %v4045_v43 = vld [vmem:[#allocation8 + $0x144] sm:$0xf] }
 0x106   :  { %2148 = vmatpush.bf16.msrb.mxu0 %v3460_v57  ;;  %v3585_v57 = vld [vmem:[#allocation8 + $0x178] sm:$0xf0] }
 0x107   :  { %2161 = vmatpush.bf16.msrb.mxu1 %v3524_v1  ;;  %vm1186_vm4 = vcmp.gt.f32.partialorder %v1105_v51, 0.0  ;;  %v1190_v0 = vmul.f32 0.01, %v1105_v51  ;;  %v3528_v1 = vor.u32 %v4038_v50, %v3527_v49  ;;  %v3588_v3 = vor.u32 %v4051_v53, %v3585_v57  ;;  %v4043_v49 = vld [vmem:[#allocation8 + $0x134] sm:$0xf] }
 0x108   :  { %v3553_v50 = vld [vmem:[#allocation8 + $0x138] sm:$0xf0]  ;;  %v3625_v53 = vld [vmem:[#allocation8 + $0x1c8] sm:$0xf0]  ;;  %v4041_v57 = vld [vmem:[#allocation8 + $0x124] sm:$0xf] }
 0x109   :  { %v1194_v4 = vsel %vm1186_vm4, %v1105_v51, %v1190_v0  ;;  %2140 = vmatpush.bf16.msra.mxu3 %v3608_v59  ;;  %2129 = vmatpush.bf16.msra.mxu2 %v3528_v1  ;;  %v3556_v58 = vor.u32 %v4043_v49, %v3553_v50  ;;  %v3545_v59 = vld [vmem:[#allocation8 + $0x128] sm:$0xf0]  ;;  %v4059_v0 = vld [vmem:[#allocation8 + $0x1b4] sm:$0xf]  ;;  %v3617_v1 = vld [vmem:[#allocation8 + $0x1b8] sm:$0xf0] }
 0x10a   :  { %2149 = vmatpush.bf16.msrb.mxu0 %v3452_v7  ;;  %v1117_v5 = vpop.f32.mrf.mxu2  ;;  %v4049_v7 = vld [vmem:[#allocation8 + $0x164] sm:$0xf]  ;;  %v4504_v9 = vpack.c.bf16 %v1194_v4, %v1194_v4  ;;  %v3548_v63 = vor.u32 %v4041_v57, %v3545_v59  ;;  %v4080_v50 = vld [vmem:[#allocation10 + $0x58] sm:$0xff] }
 0x10b   :  { %2162 = vmatpush.bf16.msrb.mxu1 %v3516_v13  ;;  %v1118_v10 = vadd.f32 %v1117_v5, %v755_v44  ;;  %v1130_v11 = vpop.f32.mrf.mxu3  ;;  %v1093_v13 = vpop.f32.mrf.mxu0  ;;  %v3580_v24 = vor.u32 %v4049_v7, %v3577_v8  ;;  %v3561_v44 = vld [vmem:[#allocation8 + $0x148] sm:$0xf0]  ;;  %v3620_v5 = vor.u32 %v4059_v0, %v3617_v1  ;;  %v4057_v7 = vld [vmem:[#allocation8 + $0x1a4] sm:$0xf]  ;;  %v1266_v57 = vld [vmem:[%s4532_s7] sm:$0x3] }
 0x10c   :  { %v1106_v18 = vpop.f32.mrf.mxu1  ;;  %2104 = vmatmul.bf16.vlgmr.msra.gmra.mxu0 %v4504_v9  ;;  %v3564_v55 = vor.u32 %v4045_v43, %v3561_v44  ;;  %v3609_v8 = vld [vmem:[#allocation8 + $0x1a8] sm:$0xf0]  ;;  %v757_v13 = vperm.slane %v4498_v12, 3 }
 0x10d   :  { %v1131_v54 = vadd.f32 %v1130_v11, %v1118_v10  ;;  %2174 = vmatpush.bf16.msrb.mxu2 %v3588_v3  ;;  %2141 = vmatpush.bf16.msra.mxu3 %v3600_v15  ;;  %v3537_v3 = vld [vmem:[#allocation8 + $0x118] sm:$0xf0]  ;;  %v4037_v10 = vld [vmem:[#allocation8 + $0x104] sm:$0xf]  ;;  %v3529_v11 = vld [vmem:[#allocation8 + $0x108] sm:$0xf0]  ;;  %v3612_v14 = vor.u32 %v4057_v7, %v3609_v8 }
 0x10e   :  { %2150 = vmatpush.bf16.msrb.mxu0 %v3444_v20  ;;  %v4054_v20 = vld [vmem:[#allocation8 + $0x184] sm:$0xf0]  ;;  %v4055_v15 = vld [vmem:[#allocation8 + $0x194] sm:$0xf]  ;;  %v3532_v17 = vor.u32 %v4037_v10, %v3529_v11  ;;  %v3601_v18 = vld [vmem:[#allocation8 + $0x198] sm:$0xf0] }
 0x10f   :  { %2163 = vmatpush.bf16.msrb.mxu1 %v3508_v25  ;;  %v4067_v25 = vld [vmem:[#allocation8 + $0x1f4] sm:$0xf]  ;;  %vm1187_vm5 = vcmp.gt.f32.partialorder %v1131_v54, 0.0  ;;  %v1191_v32 = vmul.f32 0.01, %v1131_v54 }
 0x110   :  { %v3652_v35 = vor.u32 %v4067_v25, %v3649_v26  ;;  %v3604_v25 = vor.u32 %v4055_v15, %v3601_v18  ;;  %v3593_v12 = vld [vmem:[#allocation8 + $0x188] sm:$0xf0]  ;;  %v4091_v10 = vld [vmem:[#allocation11 + $0x30] sm:$0xff] }
 0x111   :  { %v1195_v36 = vsel %vm1187_vm5, %v1131_v54, %v1191_v32  ;;  %2175 = vmatpush.bf16.msrb.mxu2 %v3580_v24 }
 0x112   :  { %2151 = vmatpush.bf16.msrb.mxu0 %v3436_v33  ;;  %v3592_v33 = vor.u32 %v4054_v20, %v3591_v19  ;;  %v1703_v21 = vpack.c.bf16 %v1195_v36, %v1195_v36  ;;  %v1119_v40 = vpop.f32.mrf.mxu2  ;;  %v4075_v36 = vld [vmem:[#allocation10 + $0x30] sm:$0xff] }
 0x113   :  { %2164 = vmatpush.bf16.msrb.mxu1 %v3500_v38  ;;  %v4065_v38 = vld [vmem:[#allocation8 + $0x1e4] sm:$0xf]  ;;  %v1132_v45 = vpop.f32.mrf.mxu3 }
 0x114   :  { %2142 = vmatpush.bf16.msra.mxu3 %v3592_v33  ;;  %2117 = vmatmul.bf16.vlgmr.msra.gmra.mxu1 %v1703_v21  ;;  %v3644_v46 = vor.u32 %v4065_v38, %v3641_v39  ;;  %v4073_v38 = vld [vmem:[#allocation10 + $0x20] sm:$0xff]  ;;  %v4072_v39 = vld [vmem:[#allocation10 + $0x18] sm:$0xff]  ;;  %v4070_v45 = vld [vmem:[#allocation10 + $0x8] sm:$0xff] }
 0x115   :  { %2176 = vmatpush.bf16.msrb.mxu2 %v3572_v37  ;;  %v4074_v37 = vld [vmem:[#allocation10 + $0x28] sm:$0xff] }
 0x116   :  { %2152 = vmatpush.bf16.msrb.mxu0 %v3428_v47  ;;  %v4063_v47 = vld [vmem:[#allocation8 + $0x1d4] sm:$0xf] }
 0x117   :  { %2165 = vmatpush.bf16.msrb.mxu1 %v3492_v52  ;;  %v3636_v51 = vor.u32 %v4063_v47, %v3633_v48  ;;  %v4061_v52 = vld [vmem:[#allocation8 + $0x1c4] sm:$0xf] }
 0x118   :  { %2187 = vmatpush.bf16.msrb.mxu3 %v3652_v35  ;;  %v3628_v60 = vor.u32 %v4061_v52, %v3625_v53  ;;  %v4076_v35 = vld [vmem:[#allocation10 + $0x38] sm:$0xff]  ;;  %v4069_v47 = vld [vmem:[#allocation10] sm:$0xff]  ;;  %v4078_v53 = vld [vmem:[#allocation10 + $0x48] sm:$0xff] }
 0x119   :  { %2177 = vmatpush.bf16.msrb.mxu2 %v3564_v55  ;;  %v4081_v48 = vld [vmem:[#allocation10 + $0x60] sm:$0xff] }
 0x11a   :  { %2153 = vmatpush.bf16.msrb.mxu0 %v3420_v61 }
 0x11b   :  { %2166 = vmatpush.bf16.msrb.mxu1 %v3484_v6  ;;  %v3540_v6 = vor.u32 %v4039_v2, %v3537_v3 }
 0x11c   :  { %2188 = vmatpush.bf16.msrb.mxu3 %v3644_v46  ;;  %v4082_v46 = vld [vmem:[#allocation10 + $0x68] sm:$0xff] }
 0x11d   :  { %2178 = vmatpush.bf16.msrb.mxu2 %v3556_v58  ;;  %v4079_v58 = vld [vmem:[#allocation10 + $0x50] sm:$0xff] }
 0x11e   :  { %2154 = vmatpush.bf16.msrb.mxu0 %v3412_v27  ;;  %v4053_v27 = vld [vmem:[#allocation8 + $0x184] sm:$0xf] }
 0x11f   :  { %2167 = vmatpush.bf16.msrb.mxu1 %v3476_v28  ;;  %v3596_v30 = vor.u32 %v4053_v27, %v3593_v12  ;;  %v4099_v27 = vld [vmem:[#allocation11 + $0x70] sm:$0xff] }
 0x120   :  { %2189 = vmatpush.bf16.msrb.mxu3 %v3636_v51 }
 0x121   :  { %2179 = vmatpush.bf16.msrb.mxu2 %v3548_v63 }
 0x122   :  { %2155 = vmatpush.bf16.msrb.mxu0 %v3404_v41  ;;  %v1143_v4 = vpop.f32.mrf.mxu0  ;;  %v4071_v41 = vld [vmem:[#allocation10 + $0x10] sm:$0xff] }
 0x123   :  { %2168 = vmatpush.bf16.msrb.mxu1 %v3468_v42  ;;  %v1144_v61 = vadd.f32 %v1143_v4, %v756_v62  ;;  %v1156_v56 = vpop.f32.mrf.mxu1  ;;  %v4083_v42 = vld [vmem:[#allocation10 + $0x70] sm:$0xff]  ;;  %v4077_v62 = vld [vmem:[#allocation10 + $0x40] sm:$0xff] }
 0x124   :  { %2190 = vmatpush.bf16.msrb.mxu3 %v3628_v60  ;;  %v1268_v60 = vperm.slane %v1266_v57, 0 }
 0x125   :  { %2156 = vmatmul.bf16.vlgmr.msrb.gmra.mxu0 %v4504_v9  ;;  %v1157_v9 = vadd.f32 %v1156_v56, %v1144_v61  ;;  %2180 = vmatpush.bf16.msrb.mxu2 %v3540_v6  ;;  %v4092_v61 = vld [vmem:[#allocation11 + $0x38] sm:$0xff]  ;;  %v1269_v6 = vperm.slane %v1266_v57, 1 }
 0x126   :  { %2169 = vmatmul.bf16.vlgmr.msrb.gmra.mxu1 %v1703_v21  ;;  %v4084_v21 = vld [vmem:[#allocation10 + $0x78] sm:$0xff]  ;;  %2370 = vmatpush.bf16.msra.mxu0 %v4092_v61 }
 0x127   :  { %vm1188_vm6 = vcmp.gt.f32.partialorder %v1157_v9, 0.0  ;;  %v1192_v16 = vmul.f32 0.01, %v1157_v9 }
 0x128   :  { %2191 = vmatpush.bf16.msrb.mxu3 %v3620_v5 }
 0x129   :  { %v1196_v19 = vsel %vm1188_vm6, %v1157_v9, %v1192_v16  ;;  %2181 = vmatpush.bf16.msrb.mxu2 %v3532_v17  ;;  %v4089_v17 = vld [vmem:[#allocation11 + $0x20] sm:$0xff] }
 0x12a   :  { %v1169_v20 = vpop.f32.mrf.mxu2  ;;  %v1704_v54 = vpack.c.bf16 %v1196_v19, %v1196_v19  ;;  %v1145_v24 = vpop.f32.mrf.mxu0  ;;  %2371 = vmatpush.bf16.msra.mxu0 %v4091_v10  ;;  %v4100_v19 = vld [vmem:[#allocation11 + $0x78] sm:$0xff]  ;;  %v4107_v10 = vld [vmem:[#allocation13 + $0x30] sm:$0xff] }
 0x12b   :  { %v1170_v22 = vadd.f32 %v1169_v20, %v757_v13  ;;  %v1182_v23 = vpop.f32.mrf.mxu3  ;;  %v1158_v26 = vpop.f32.mrf.mxu1  ;;  %2383 = vmatpush.bf16.msra.mxu1 %v4100_v19 }
 0x12c   :  { %2192 = vmatpush.bf16.msrb.mxu3 %v3612_v14  ;;  %2130 = vmatmul.bf16.vlgmr.msra.gmra.mxu2 %v1704_v54  ;;  %v4090_v14 = vld [vmem:[#allocation11 + $0x28] sm:$0xff]  ;;  %v4087_v26 = vld [vmem:[#allocation11 + $0x10] sm:$0xff] }
 0x12d   :  { %v1183_v28 = vadd.f32 %v1182_v23, %v1170_v22  ;;  %2492 = vmatpush.bf16.msra.mxu2 %v4076_v35  ;;  %v4088_v23 = vld [vmem:[#allocation11 + $0x18] sm:$0xff] }
 0x12e   :  { %2372 = vmatpush.bf16.msra.mxu0 %v4090_v14  ;;  %v4104_v14 = vld [vmem:[#allocation13 + $0x18] sm:$0xff] }
 0x12f   :  { %vm1189_vm7 = vcmp.gt.f32.partialorder %v1183_v28, 0.0  ;;  %v1193_v29 = vmul.f32 0.01, %v1183_v28  ;;  %2384 = vmatpush.bf16.msra.mxu1 %v4099_v27 }
 0x130   :  { %2193 = vmatpush.bf16.msrb.mxu3 %v3604_v25 }
 0x131   :  { %v1197_v31 = vsel %vm1189_vm7, %v1183_v28, %v1193_v29  ;;  %2493 = vmatpush.bf16.msra.mxu2 %v4075_v36 }
 0x132   :  { %v1705_v32 = vpack.c.bf16 %v1197_v31, %v1197_v31  ;;  %v1171_v33 = vpop.f32.mrf.mxu2  ;;  %2373 = vmatpush.bf16.msra.mxu0 %v4089_v17  ;;  %v4086_v31 = vld [vmem:[#allocation11 + $0x8] sm:$0xff]  ;;  %v4101_v17 = vld [vmem:[#allocation13] sm:$0xff] }
 0x133   :  { %v1184_v34 = vpop.f32.mrf.mxu3  ;;  %v4085_v33 = vld [vmem:[#allocation11] sm:$0xff] }
 0x134   :  { %2194 = vmatpush.bf16.msrb.mxu3 %v3596_v30  ;;  %v4097_v34 = vld [vmem:[#allocation11 + $0x60] sm:$0xff] }
 0x135   :  { %2143 = vmatmul.bf16.vlgmr.msra.gmra.mxu3 %v1705_v32  ;;  %2494 = vmatpush.bf16.msra.mxu2 %v4074_v37  ;;  %v4096_v37 = vld [vmem:[#allocation11 + $0x58] sm:$0xff] }
 0x136   :  { %2374 = vmatpush.bf16.msra.mxu0 %v4088_v23  ;;  %v4123_v23 = vld [vmem:[%s4537_s12] ss:$0 sm:$0xff] }
 0x138   :  { %2505 = vmatpush.bf16.msra.mxu3 %v4084_v21 }
 0x139   :  { %2495 = vmatpush.bf16.msra.mxu2 %v4073_v38  ;;  %v4095_v38 = vld [vmem:[#allocation11 + $0x50] sm:$0xff] }
 0x13a   :  { %2375 = vmatpush.bf16.msra.mxu0 %v4087_v26 }
 0x13c   :  { %2182 = vmatmul.bf16.vlgmr.msrb.gmra.mxu2 %v1704_v54  ;;  %2506 = vmatpush.bf16.msra.mxu3 %v4083_v42  ;;  %v4093_v42 = vld [vmem:[#allocation11 + $0x40] sm:$0xff] }
 0x13d   :  { %2496 = vmatpush.bf16.msra.mxu2 %v4072_v39 }
 0x13e   :  { %2376 = vmatpush.bf16.msra.mxu0 %v4086_v31 }
 0x140   :  { %2507 = vmatpush.bf16.msra.mxu3 %v4082_v46 }
 0x141   :  { %2497 = vmatpush.bf16.msra.mxu2 %v4071_v41  ;;  %v1770_v41 = vld [vmem:[%s4534_s9] sm:$0x3] }
 0x142   :  { %2377 = vmatpush.bf16.msra.mxu0 %v4085_v33 }
 0x144   :  { %2508 = vmatpush.bf16.msra.mxu3 %v4081_v48 }
 0x145   :  { %2195 = vmatmul.bf16.vlgmr.msrb.gmra.mxu3 %v1705_v32  ;;  %2498 = vmatpush.bf16.msra.mxu2 %v4070_v45  ;;  %v4098_v32 = vld [vmem:[#allocation11 + $0x68] sm:$0xff] }
 0x146   :  { %2385 = vmatpush.bf16.msra.mxu1 %v4098_v32 }
 0x148   :  { %2509 = vmatpush.bf16.msra.mxu3 %v4080_v50 }
 0x149   :  { %v1601_v40 = vpop.f32.mrf.mxu0  ;;  %2499 = vmatpush.bf16.msra.mxu2 %v4069_v47 }
 0x14a   :  { %v1602_v63 = vadd.f32 %v1601_v40, %v1268_v60  ;;  %2386 = vmatpush.bf16.msra.mxu1 %v4097_v34  ;;  %v4094_v40 = vld [vmem:[#allocation11 + $0x48] sm:$0xff] }
 0x14c   :  { %2510 = vmatpush.bf16.msra.mxu3 %v4079_v58 }
 0x14e   :  { %2387 = vmatpush.bf16.msra.mxu1 %v4096_v37 }
 0x150   :  { %2511 = vmatpush.bf16.msra.mxu3 %v4078_v53  ;;  %v1773_v53 = vperm.slane %v1770_v41, 1 }
 0x151   :  { %v1614_v43 = vpop.f32.mrf.mxu1  ;;  %v1603_v44 = vpop.f32.mrf.mxu0 }
 0x152   :  { %v1615_v1 = vadd.f32 %v1614_v43, %v1602_v63  ;;  %2388 = vmatpush.bf16.msra.mxu1 %v4095_v38  ;;  %v1772_v43 = vperm.slane %v1770_v41, 0 }
 0x154   :  { %2512 = vmatpush.bf16.msra.mxu3 %v4077_v62 }
 0x156   :  { %2389 = vmatpush.bf16.msra.mxu1 %v4094_v40 }
 0x159   :  { %v1616_v55 = vpop.f32.mrf.mxu1 }
 0x15a   :  { %2390 = vmatpush.bf16.msra.mxu1 %v4093_v42 }
 0x162   :  { %v1653_v49 = vpop.f32.mrf.mxu0 }
 0x163   :  { %v1666_v51 = vpop.f32.mrf.mxu1  ;;  %v1654_v9 = vadd.f32 %v1653_v49, %v1269_v6 }
 0x165   :  { %v1667_v15 = vadd.f32 %v1666_v51, %v1654_v9 }
 0x16a   :  { %v1655_v52 = vpop.f32.mrf.mxu0 }
 0x16b   :  { %v1668_v59 = vpop.f32.mrf.mxu1 }
 0x16f   :  { %v1627_v0 = vpop.f32.mrf.mxu2 }
 0x170   :  { %v1628_v2 = vadd.f32 %v1627_v0, %v1615_v1 }
 0x177   :  { %v1640_v3 = vpop.f32.mrf.mxu3  ;;  %v1629_v5 = vpop.f32.mrf.mxu2 }
 0x178   :  { %v1641_v4 = vadd.f32 %v1640_v3, %v1628_v2 }
 0x17a   :  { %vm1696_vm8 = vcmp.gt.f32.partialorder %v1641_v4, 0.0  ;;  %v1698_v56 = vmul.f32 0.01, %v1641_v4 }
 0x17c   :  { %v1700_v7 = vsel %vm1696_vm8, %v1641_v4, %v1698_v56  ;;  %v4108_v56 = vld [vmem:[#allocation13 + $0x38] sm:$0xff] }
 0x17d   :  { %v2206_v8 = vpack.c.bf16 %v1700_v7, %v1700_v7  ;;  %2595 = vmatpush.bf16.msrb.mxu0 %v4108_v56 }
 0x17f   :  { %v1642_v11 = vpop.f32.mrf.mxu3  ;;  %2500 = vmatmul.bf16.vlgmr.msra.gmra.mxu2 %v2206_v8  ;;  %v1679_v13 = vpop.f32.mrf.mxu2 }
 0x180   :  { %v1680_v16 = vadd.f32 %v1679_v13, %v1667_v15  ;;  %v4106_v11 = vld [vmem:[#allocation13 + $0x28] sm:$0xff]  ;;  %v4105_v13 = vld [vmem:[#allocation13 + $0x20] sm:$0xff]  ;;  %v4103_v15 = vld [vmem:[#allocation13 + $0x10] sm:$0xff] }
 0x181   :  { %2596 = vmatpush.bf16.msrb.mxu0 %v4107_v10 }
 0x185   :  { %2597 = vmatpush.bf16.msrb.mxu0 %v4106_v11 }
 0x187   :  { %v1692_v18 = vpop.f32.mrf.mxu3  ;;  %v1681_v22 = vpop.f32.mrf.mxu2 }
 0x188   :  { %v1693_v20 = vadd.f32 %v1692_v18, %v1680_v16  ;;  %v4102_v16 = vld [vmem:[#allocation13 + $0x8] sm:$0xff] }
 0x189   :  { %v2105_v54 = vpop.f32.mrf.mxu0  ;;  %2598 = vmatpush.bf16.msrb.mxu0 %v4105_v13 }
 0x18a   :  { %vm1697_vm9 = vcmp.gt.f32.partialorder %v1693_v20, 0.0  ;;  %v1699_v24 = vmul.f32 0.01, %v1693_v20  ;;  %v2106_v45 = vadd.f32 %v2105_v54, %v1772_v43 }
 0x18c   :  { %v1701_v25 = vsel %vm1697_vm9, %v1693_v20, %v1699_v24 }
 0x18d   :  { %v2207_v12 = vpack.c.bf16 %v1701_v25, %v1701_v25  ;;  %2599 = vmatpush.bf16.msrb.mxu0 %v4104_v14 }
 0x18f   :  { %v1694_v29 = vpop.f32.mrf.mxu3  ;;  %2513 = vmatmul.bf16.vlgmr.msra.gmra.mxu3 %v2207_v12 }
 0x190   :  { %v4124_v29 = vld [vmem:[%s4543_s27] ss:$0 sm:$0xff] }
 0x191   :  { %v2118_v28 = vpop.f32.mrf.mxu1  ;;  %v2107_v30 = vpop.f32.mrf.mxu0  ;;  %2600 = vmatpush.bf16.msrb.mxu0 %v4103_v15 }
 0x192   :  { %v2119_v55 = vadd.f32 %v2118_v28, %v2106_v45 }
 0x195   :  { %2601 = vmatpush.bf16.msrb.mxu0 %v4102_v16 }
 0x199   :  { %v2120_v35 = vpop.f32.mrf.mxu1  ;;  %2602 = vmatpush.bf16.msrb.mxu0 %v4101_v17 }
 0x1a2   :  { %v2157_v36 = vpop.f32.mrf.mxu0 }
 0x1a3   :  { %v2170_v39 = vpop.f32.mrf.mxu1  ;;  %v2158_v60 = vadd.f32 %v2157_v36, %v1773_v53 }
 0x1a5   :  { %v2171_v62 = vadd.f32 %v2170_v39, %v2158_v60 }
 0x1aa   :  { %v2159_v21 = vpop.f32.mrf.mxu0 }
 0x1ab   :  { %v2172_v44 = vpop.f32.mrf.mxu1 }
 0x1af   :  { %v2131_v46 = vpop.f32.mrf.mxu2 }
 0x1b0   :  { %v2132_v47 = vadd.f32 %v2131_v46, %v2119_v55 }
 0x1b7   :  { %v2133_v50 = vpop.f32.mrf.mxu2 }
 0x1b8   :  { %v2144_v48 = vpop.f32.mrf.mxu3 }
 0x1b9   :  { %v2145_v49 = vadd.f32 %v2144_v48, %v2132_v47 }
 0x1bb   :  { %vm2200_vm10 = vcmp.gt.f32.partialorder %v2145_v49, 0.0  ;;  %v2202_v51 = vmul.f32 0.01, %v2145_v49 }
 0x1bd   :  { %v2204_v58 = vsel %vm2200_vm10, %v2145_v49, %v2202_v51 }
 0x1be   :  { %v2240_v52 = vpack.c.bf16 %v2204_v58, %v2204_v58 }
 0x1bf   :  { %v2183_v59 = vpop.f32.mrf.mxu2 }
 0x1c0   :  { %v2146_v57 = vpop.f32.mrf.mxu3  ;;  %2378 = vmatmul.bf16.vlgmr.msra.gmra.mxu0 %v2240_v52  ;;  %v2184_v63 = vadd.f32 %v2183_v59, %v2171_v62 }
 0x1c7   :  { %v2185_v2 = vpop.f32.mrf.mxu2 }
 0x1c8   :  { %v2196_v0 = vpop.f32.mrf.mxu3 }
 0x1c9   :  { %v2197_v1 = vadd.f32 %v2196_v0, %v2184_v63 }
 0x1cb   :  { %vm2201_vm11 = vcmp.gt.f32.partialorder %v2197_v1, 0.0  ;;  %v2203_v3 = vmul.f32 0.01, %v2197_v1 }
 0x1cd   :  { %v2205_v4 = vsel %vm2201_vm11, %v2197_v1, %v2203_v3 }
 0x1ce   :  { %v2241_v5 = vpack.c.bf16 %v2205_v4, %v2205_v4 }
 0x1d0   :  { %v2198_v61 = vpop.f32.mrf.mxu3  ;;  %2391 = vmatmul.bf16.vlgmr.msra.gmra.mxu1 %v2241_v5 }
 0x202   :  { %v2501_v6 = vpop.f32.mrf.mxu2 }
 0x20a   :  { %v2503_v7 = vpop.f32.mrf.mxu2 }
 0x212   :  { %v2514_v8 = vpop.f32.mrf.mxu3 }
 0x21a   :  { %v2516_v9 = vpop.f32.mrf.mxu3 }
 0x23d   :  { %v2379_v18 = vpop.f32.mrf.mxu0 }
 0x245   :  { %v2381_v19 = vpop.f32.mrf.mxu0 }
 0x24d   :  { %v2392_v20 = vpop.f32.mrf.mxu1 }
 0x24e   :  { %v2393_v54 = vadd.f32 %v2392_v20, %v2379_v18 }
 0x250   :  { %v2502_v22 = vadd.f32 %v2501_v6, %v2393_v54 }
 0x252   :  { %v2515_v24 = vadd.f32 %v2514_v8, %v2502_v22 }
 0x254   :  { %v2522_v25 = vadd.f32 %v4123_v23, %v2515_v24 }
 0x255   :  { %v2394_v26 = vpop.f32.mrf.mxu1 }
 0x256   :  { %v2524_v27 = vmul.f32 0.01, %v2522_v25  ;;  %vm2523_vm12 = vcmp.gt.f32.partialorder %v2522_v25, 0.0 }
 0x258   :  { %v2525_v12 = vsel %vm2523_vm12, %v2522_v25, %v2524_v27 }
 0x259   :  { %v2526_v28 = vpack.c.bf16 %v2525_v12, %v2525_v12 }
 0x25b   :  { %2603 = vmatmul.bf16.vlgmr.msrb.gmra.mxu0 %v2526_v28 }
 0x2d8   :  { %v2604_v30 = vpop.f32.mrf.mxu0 }
 0x2d9   :  { %v2605_v31 = vadd.f32 %v4124_v29, %v2604_v30 }
 0x2db   :  { %2608 = vst [vmem:[#allocation14] sm:$0x3] %v2605_v31 }
 0x2dc   :  { %2619 = dma.vmem_to_hbm [thread:$0]  %s2615_s11, 32, %s2617_s20, [#allocation4]  }
 0x2e0   :  { %v2606_v32 = vpop.f32.mrf.mxu0 }
 0x2e1   :  { %4325 = dma.done.wait [#allocation4], 32  }
 0x2e2   :  { %4326 = vsyncadd [#allocation4], 4294967264 }
 0x2e3   :  { %2624 = vsyncpa [#allocation3], 1 }
 0x2e4   :  { %2625 = vsyncpa [#allocation6], 1 }
 0x2e5   :  { %2626 = vsyncpa [#allocation9], 1 }
 0x2e6   :  { %2627 = vsyncpa [#allocation12], 1 }
 0x2e7   :  { %2628 = vsyncpa [#allocation4], 1 }

</bundles_post_ra>
